<compile_context>
chip_gen: v7x
topology: tpu7x:2x2x1
jax: 0.10.0
libtpu: 0.0.40
codegen_flags: <defaults>
</compile_context>

<pallas_src>
import functools

import jax
import jax.numpy as jnp
from jax import lax
from jax.experimental import pallas as pl
from jax.experimental.pallas import tpu as pltpu


def _bottleneck_kernel(x_ref, xp_ref, xn_ref, w1_ref, w2_ref, w3_ref, bn_ref,
                       o_ref, *, fuse_k3):
    # Blocks:
    #   x_ref  : (1, TL, C)   current L-tile (NLC layout)
    #   xp_ref : (1, 8,  C)   8-row block ending right before this tile
    #   xn_ref : (1, 8,  C)   8-row block starting right after this tile
    #   w1_ref : (C, P)       conv_1 weight, bn_1 scale folded in
    #   w2_ref : (3P, P)      conv_2 weight (taps stacked on K), bn_2 folded in
    #   w3_ref : (P, P)       conv_3 weight, bn_3 scale folded in
    #   bn_ref : (8, P)       rows: [b1, b2, b3 + b_res, s_res, 0, 0, 0, 0]
    #   o_ref  : (1, TL, P)   output tile
    j = pl.program_id(1)
    n_j = pl.num_programs(1)
    TL = o_ref.shape[1]
    P = w2_ref.shape[1]
    cdt = w1_ref.dtype  # compute dtype for MXU operands (bf16 or f32)

    bn = bn_ref[...].astype(jnp.float32)          # (8, P)
    b1, b2, b3 = bn[0:1], bn[1:2], bn[2:3]        # b3 has bn_res shift folded in
    s_res = bn[3:4]

    x = x_ref[0]                                   # (TL, C)
    xp = xp_ref[0]                                 # (8, C)
    xn = xn_ref[0]                                 # (8, C)

    # residual = bn_res(x); its shift is folded into b3 in the wrapper.
    residual = x.astype(jnp.float32) * s_res       # (TL, P)

    # conv_1 (1x1, bn_1 scale folded) + shift + relu on the halo-extended rows
    # [l-1 .. l+TL] so conv_2 needs no cross-tile traffic.
    x_ext = jnp.concatenate([xp[7:8], x, xn[0:1]], axis=0)     # (TL+2, C)
    h_ext = jnp.dot(x_ext, w1_ref[...],
                    preferred_element_type=jnp.float32) + b1
    h_ext = jnp.maximum(h_ext, 0.0)

    # Zero the halo rows that correspond to conv_2's zero padding at the
    # sequence ends (first tile's left halo, last tile's right halo).
    # Mask is (TL+2, 1) and broadcast over lanes — one VPU multiply.
    row = lax.broadcasted_iota(jnp.int32, (TL + 2, 1), 0)
    keep = jnp.logical_not(((j == 0) & (row == 0)) |
                           ((j == n_j - 1) & (row == TL + 1)))
    h_ext = (h_ext * keep.astype(jnp.float32)).astype(cdt)

    # conv_2 (k=3, pad=1, bn_2 folded).
    if fuse_k3:
        # One K=3P MXU matmul (best when MXU-bound: P>=256 on v6e/v7x).
        hcat = jnp.concatenate(
            [h_ext[0:TL], h_ext[1:TL + 1], h_ext[2:TL + 2]], axis=-1)  # (TL, 3P)
        h2 = jnp.dot(hcat, w2_ref[...], preferred_element_type=jnp.float32)
    else:
        # Three accumulating P-wide dots (avoids the (TL,3P) concat buffer;
        # for v5e's single vector-store slot / small-P VPU-bound configs).
        w2 = w2_ref[...]
        h2 = jnp.dot(h_ext[0:TL], w2[0:P],
                     preferred_element_type=jnp.float32)
        h2 = h2 + jnp.dot(h_ext[1:TL + 1], w2[P:2 * P],
                          preferred_element_type=jnp.float32)
        h2 = h2 + jnp.dot(h_ext[2:TL + 2], w2[2 * P:3 * P],
                          preferred_element_type=jnp.float32)
    h2 = jnp.maximum(h2 + b2, 0.0).astype(cdt)

    # conv_3 (1x1, bn_3 folded) + shift (bn_res shift included)
    h3 = jnp.dot(h2, w3_ref[...], preferred_element_type=jnp.float32) + b3

    # add residual + final relu, in f32, then a single cast to the out dtype.
    o_ref[0] = jnp.maximum(h3 + residual, 0.0).astype(o_ref.dtype)


def _device_vmem_capacity():
    try:
        return int(pltpu.get_tpu_info().vmem_capacity_bytes)
    except Exception:
        return 128 * 1024 * 1024  # v5e/v6e default if the query is unavailable


def _estimate_vmem_bytes(TL, C, P, in_b, out_b, w_b, wbuf):
    """Rough per-kernel VMEM footprint for tile length TL."""
    x_bufs = 2 * TL * C * in_b + 2 * 2 * 8 * C * in_b   # x tile + xp/xn halos (2-deep)
    o_bufs = 2 * TL * P * out_b                          # out tile (2-deep)
    w_bufs = wbuf * ((C * P + 4 * P * P) * w_b + 8 * P * 4)
    interm = (TL + 2) * (C + P) * 4 + 3 * TL * P * max(w_b, 2) + 3 * TL * P * 4
    return x_bufs + o_bufs + w_bufs + interm


def _pick_tile_len(L, N, tl_max, fits):
    """Pick the L-tile: largest multiple-of-8 divisor of L that fits VMEM,
    preferring an even total grid (v7x megacore) unless it would more than
    halve the tile. Raises instead of silently blowing the VMEM budget."""
    divs = [t for t in range(8, L + 1, 8) if L % t == 0]
    cands = [t for t in divs if t <= tl_max] or [min(divs)]
    tmax = max(cands)

    def order_key(t):
        even_ok = ((N * (L // t)) % 2 == 0) and (2 * t >= tmax)
        return (0 if even_ok else 1, -t)

    for t in sorted(cands, key=order_key):
        if fits(t):
            return t
    raise ValueError(
        "Bottleneck: no L-tile fits the VMEM budget; reduce planes, pad L to "
        "gain smaller divisors, or raise vmem_limit_bytes.")


def bottleneck_pallas(x, params, *, compute_dtype=jnp.bfloat16, out_dtype=None,
                      data_format="NCL", tl_max=None, fuse_k3=True,
                      weight_buffers=1, vmem_limit_bytes=None):
    """Fused Bottleneck forward.

    x: (N, C, L) if data_format == "NCL" (PyTorch layout) or (N, L, C) if
       "NLC".  Prefer "NLC" end-to-end: the NCL path does two full HBM
       transposes in the wrapper which can cost as much as the kernel itself.
    Returns the result in the same layout as the input, dtype `out_dtype`
    (default: `compute_dtype`).
    """
    if data_format == "NCL":
        N, C, L = x.shape
        x_nlc = jnp.transpose(x, (0, 2, 1))
    elif data_format == "NLC":
        N, L, C = x.shape
        x_nlc = x
    else:
        raise ValueError(data_format)

    P = params["w1"].shape[0]
    # TODO(synk): only the default config (stride=1, use_1x1conv=False,
    # downsample=None, inplanes == planes) is implemented.
    if C != P:
        raise ValueError("residual add requires inplanes == planes (default config)")
    if L % 8 != 0:
        raise ValueError("sequence length must be a multiple of 8 (pad L)")

    cdt = jnp.dtype(compute_dtype)
    odt = jnp.dtype(out_dtype) if out_dtype is not None else cdt

    # Per-generation VMEM sizing: ~48 MiB limit / TL<=256 on v7x (64 MiB
    # physical), ~96 MiB / TL<=512 on v5e/v6e (128 MiB physical).
    vmem_cap = _device_vmem_capacity()
    if vmem_limit_bytes is None:
        vmem_limit_bytes = min(vmem_cap * 3 // 4, 96 * 1024 * 1024)
    vmem_limit_bytes = int(vmem_limit_bytes)
    if tl_max is None:
        tl_max = 512 if vmem_cap >= 96 * 1024 * 1024 else 256

    wbuf_est = weight_buffers if weight_buffers else 2
    budget = int(min(vmem_limit_bytes, vmem_cap) * 0.7)
    fits = lambda t: _estimate_vmem_bytes(
        t, C, P, cdt.itemsize, odt.itemsize, cdt.itemsize, wbuf_est) <= budget
    TL = _pick_tile_len(L, N, tl_max, fits)
    n_j = L // TL
    e_j = TL // 8          # tile length in 8-row edge-block units
    n_eblk = L // 8

    def fold_bn(g, b, m, v, eps=1e-5):
        s = g / jnp.sqrt(v + eps)
        return s, b - m * s

    s1, b1 = fold_bn(*params["bn1"])
    s2, b2 = fold_bn(*params["bn2"])
    s3, b3 = fold_bn(*params["bn3"])
    sr, br = fold_bn(*params["bn_res"])

    # Fold BN scales into conv weights; stack the k=3 taps along K so conv_2
    # is a single (TL, 3P) @ (3P, P) matmul (or three P-wide dots).
    w1 = (jnp.transpose(params["w1"], (1, 0)) * s1[None, :]).astype(cdt)   # (C, P)
    w2 = (jnp.transpose(params["w2"], (2, 1, 0)).reshape(3 * P, P)
          * s2[None, :]).astype(cdt)                                       # (3P, P)
    w3 = (jnp.transpose(params["w3"], (1, 0)) * s3[None, :]).astype(cdt)   # (P, P)

    # Pack the remaining per-channel vectors into one (8, P) slab.
    # bn_res shift is folded into the conv_3 shift (same post-add sum).
    bn_pack = jnp.zeros((8, P), jnp.float32)
    bn_pack = bn_pack.at[0].set(b1).at[1].set(b2)
    bn_pack = bn_pack.at[2].set(b3 + br)
    bn_pack = bn_pack.at[3].set(sr)

    x_c = x_nlc.astype(cdt)

    flops = 2 * N * L * (C * P + 3 * P * P + P * P) + 8 * N * L * P
    bytes_accessed = (N * L * (C * cdt.itemsize + P * odt.itemsize)
                      + (C * P + 4 * P * P) * cdt.itemsize + 8 * P * 4)
    cost = pl.CostEstimate(flops=flops, transcendentals=0,
                           bytes_accessed=bytes_accessed)

    kernel = functools.partial(_bottleneck_kernel, fuse_k3=fuse_k3)

    def _const_spec(shape, wbuf):
        imap = lambda b, j: (0,) * len(shape)
        if wbuf is not None and wbuf != 2 and hasattr(pl, "Buffered"):
            # Grid-invariant block: single-buffer to halve weight VMEM (v7x).
            return pl.BlockSpec(shape, imap, pipeline_mode=pl.Buffered(wbuf))
        return pl.BlockSpec(shape, imap)

    def _call(wbuf):
        return pl.pallas_call(
            kernel,
            out_shape=jax.ShapeDtypeStruct((N, L, P), odt),
            grid_spec=pltpu.PrefetchScalarGridSpec(
                num_scalar_prefetch=0,
                grid=(N, n_j),
                in_specs=[
                    # current L-tile
                    pl.BlockSpec((1, TL, C), lambda b, j: (b, j, 0)),
                    # 8-row block whose last row is x[j*TL - 1] (clamped at j==0)
                    pl.BlockSpec((1, 8, C),
                                 lambda b, j: (b, jnp.maximum(j * e_j - 1, 0), 0)),
                    # 8-row block whose first row is x[(j+1)*TL] (clamped at last)
                    pl.BlockSpec((1, 8, C),
                                 lambda b, j: (b, jnp.minimum((j + 1) * e_j,
                                                              n_eblk - 1), 0)),
                    _const_spec((C, P), wbuf),        # w1 (bn_1 folded)
                    _const_spec((3 * P, P), wbuf),    # w2 (bn_2 folded, taps stacked)
                    _const_spec((P, P), wbuf),        # w3 (bn_3 folded)
                    _const_spec((8, P), wbuf),        # packed BN shifts + res scale
                ],
                out_specs=pl.BlockSpec((1, TL, P), lambda b, j: (b, j, 0)),
            ),
            compiler_params=pltpu.CompilerParams(
                dimension_semantics=("parallel", "parallel"),
                vmem_limit_bytes=vmem_limit_bytes),
            cost_estimate=cost,
        )(x_c, x_c, x_c, w1, w2, w3, bn_pack)

    want_single = (weight_buffers is not None and weight_buffers != 2
                   and hasattr(pl, "Buffered"))
    try:
        out = _call(weight_buffers if want_single else weight_buffers or 2)
    except Exception:
        if not want_single:
            raise
        out = _call(2)   # jax build without Buffered(1) support in pallas_call

    if data_format == "NCL":
        return jnp.transpose(out, (0, 2, 1))
    return out


def bottleneck_reference(x_ncl, params):
    """Pure-JAX reference using lax.conv_general_dilated in NCL layout."""
    dn = ("NCH", "OIH", "NCH")

    def conv1d(x, w, padding):
        return lax.conv_general_dilated(x, w, window_strides=(1,),
                                        padding=[padding],
                                        dimension_numbers=dn)

    def bn(x, g, b, m, v, eps=1e-5):
        scale = (g / jnp.sqrt(v + eps))[None, :, None]
        shift = (b - m * g / jnp.sqrt(v + eps))[None, :, None]
        return x * scale + shift

    residual = bn(x_ncl, *params["bn_res"])
    out = conv1d(x_ncl, params["w1"][:, :, None], (0, 0))
    out = jax.nn.relu(bn(out, *params["bn1"]))
    out = conv1d(out, params["w2"], (1, 1))
    out = jax.nn.relu(bn(out, *params["bn2"]))
    out = conv1d(out, params["w3"][:, :, None], (0, 0))
    out = bn(out, *params["bn3"])
    return jax.nn.relu(out + residual)


def make_params(key, inplanes, planes):
    ks = jax.random.split(key, 20)
    it = iter(range(20))

    def nrm(shape, scale=0.3):
        return scale * jax.random.normal(ks[next(it)], shape, jnp.float32)

    def bn_params(c):
        gamma = jax.random.uniform(ks[next(it)], (c,), jnp.float32, 0.5, 1.5)
        beta = nrm((c,), 0.1)
        mean = nrm((c,), 0.1)
        var = jax.random.uniform(ks[next(it)], (c,), jnp.float32, 0.5, 1.5)
        return (gamma, beta, mean, var)

    return {
        "w1": nrm((planes, inplanes)),          # Conv1d k=1 weight (O, I)
        "w2": nrm((planes, planes, 3)),         # Conv1d k=3 weight (O, I, K)
        "w3": nrm((planes, planes)),            # Conv1d k=1 weight (O, I)
        "bn1": bn_params(planes),
        "bn2": bn_params(planes),
        "bn3": bn_params(planes),
        "bn_res": bn_params(planes),
    }


if __name__ == "__main__":
    key = jax.random.PRNGKey(0)
    k_x, k_p, k_x2 = jax.random.split(key, 3)

    N, C, L = 2, 4, 16                      # inplanes == planes == 4
    params = make_params(k_p, inplanes=C, planes=C)
    x = jax.random.normal(k_x, (N, C, L), jnp.float32)
    ref = jax.block_until_ready(bottleneck_reference(x, params))

    # 1) f32 path, forced small tiles (TL=8 -> halo exchange), tight check.
    out = jax.block_until_ready(
        bottleneck_pallas(x, params, tl_max=8, compute_dtype=jnp.float32))
    assert out.shape == (N, C, L)
    assert jnp.allclose(out, ref, rtol=1e-4, atol=1e-4), "mismatch (f32, L=16)"

    # NLC layout path (no wrapper transposes), same config.
    x_nlc = jnp.transpose(x, (0, 2, 1))
    out_nlc = jax.block_until_ready(
        bottleneck_pallas(x_nlc, params, tl_max=8, compute_dtype=jnp.float32,
                          data_format="NLC"))
    assert jnp.allclose(jnp.transpose(out_nlc, (0, 2, 1)), ref,
                        rtol=1e-4, atol=1e-4), "mismatch (NLC)"

    # 2) longer sequence, un-merged k=3 taps (v5e fallback path), f32.
    x2 = jax.random.normal(k_x2, (N, C, 40), jnp.float32)
    ref2 = jax.block_until_ready(bottleneck_reference(x2, params))
    out2 = jax.block_until_ready(
        bottleneck_pallas(x2, params, tl_max=8, compute_dtype=jnp.float32,
                          fuse_k3=False))
    assert jnp.allclose(out2, ref2, rtol=1e-4, atol=1e-4), "mismatch (3-dot, L=40)"

    # 3) default fast path: bf16 compute + bf16 output, small tiles (halos).
    out_bf = jax.block_until_ready(bottleneck_pallas(x2, params, tl_max=8))
    assert out_bf.dtype == jnp.bfloat16
    assert jnp.allclose(out_bf.astype(jnp.float32), ref2,
                        rtol=0.1, atol=0.25), "mismatch (bf16, TL=8)"

    # 4) fully automatic tile / VMEM sizing (single L-tile at this size).
    out_auto = jax.block_until_ready(bottleneck_pallas(x2, params))
    assert jnp.allclose(out_auto.astype(jnp.float32), ref2,
                        rtol=0.1, atol=0.25), "mismatch (bf16, auto)"

    print("KERNEL_OK")
</pallas_src>

<mosaic_0001>
module attributes {stable_mosaic.version = 11 : i64} {
  func.func @_bottleneck_kernel(%arg0: i32, %arg1: i32, %arg2: memref<1x8x4xf32, #tpu.memory_space<vmem>>, %arg3: memref<1x8x4xf32, #tpu.memory_space<vmem>>, %arg4: memref<1x8x4xf32, #tpu.memory_space<vmem>>, %arg5: memref<4x4xf32, #tpu.memory_space<vmem>>, %arg6: memref<12x4xf32, #tpu.memory_space<vmem>>, %arg7: memref<4x4xf32, #tpu.memory_space<vmem>>, %arg8: memref<8x4xf32, #tpu.memory_space<vmem>>, %arg9: memref<1x8x4xf32, #tpu.memory_space<vmem>>) attributes {dimension_semantics = [#tpu.dimension_semantics<parallel>, #tpu.dimension_semantics<parallel>], iteration_bounds = array<i64: 2, 2>, scalar_prefetch = 0 : i64, scratch_operands = 0 : i64, tpu.core_type = #tpu.core_type<tc>, window_params = [{transform_indices = @transform_0, window_bounds = array<i64: 1, 8, 4>}, {transform_indices = @transform_1, window_bounds = array<i64: 1, 8, 4>}, {transform_indices = @transform_2, window_bounds = array<i64: 1, 8, 4>}, {pipeline_mode = #tpu.pipeline_mode<synchronous>, transform_indices = @transform_3, window_bounds = array<i64: 4, 4>}, {pipeline_mode = #tpu.pipeline_mode<synchronous>, transform_indices = @transform_4, window_bounds = array<i64: 12, 4>}, {pipeline_mode = #tpu.pipeline_mode<synchronous>, transform_indices = @transform_5, window_bounds = array<i64: 4, 4>}, {pipeline_mode = #tpu.pipeline_mode<synchronous>, transform_indices = @transform_6, window_bounds = array<i64: 8, 4>}, {transform_indices = @transform_7, window_bounds = array<i64: 1, 8, 4>}]} {
    %c0 = arith.constant 0 : index
    %c0_0 = arith.constant 0 : index
    %0 = vector.load %arg8[%c0, %c0_0] : memref<8x4xf32, #tpu.memory_space<vmem>>, vector<8x4xf32>
    %1 = vector.extract_strided_slice %0 {offsets = [0, 0], sizes = [1, 4], strides = [1, 1]} : vector<8x4xf32> to vector<1x4xf32>
    %2 = vector.extract_strided_slice %0 {offsets = [1, 0], sizes = [1, 4], strides = [1, 1]} : vector<8x4xf32> to vector<1x4xf32>
    %3 = vector.extract_strided_slice %0 {offsets = [2, 0], sizes = [1, 4], strides = [1, 1]} : vector<8x4xf32> to vector<1x4xf32>
    %4 = vector.extract_strided_slice %0 {offsets = [3, 0], sizes = [1, 4], strides = [1, 1]} : vector<8x4xf32> to vector<1x4xf32>
    %c0_1 = arith.constant 0 : index
    %c0_2 = arith.constant 0 : index
    %c0_3 = arith.constant 0 : index
    %5 = vector.load %arg2[%c0_1, %c0_2, %c0_3] : memref<1x8x4xf32, #tpu.memory_space<vmem>>, vector<1x8x4xf32>
    %6 = vector.shape_cast %5 : vector<1x8x4xf32> to vector<8x4xf32>
    %c0_4 = arith.constant 0 : index
    %c0_5 = arith.constant 0 : index
    %c0_6 = arith.constant 0 : index
    %7 = vector.load %arg3[%c0_4, %c0_5, %c0_6] : memref<1x8x4xf32, #tpu.memory_space<vmem>>, vector<1x8x4xf32>
    %8 = vector.shape_cast %7 : vector<1x8x4xf32> to vector<8x4xf32>
    %c0_7 = arith.constant 0 : index
    %c0_8 = arith.constant 0 : index
    %c0_9 = arith.constant 0 : index
    %9 = vector.load %arg4[%c0_7, %c0_8, %c0_9] : memref<1x8x4xf32, #tpu.memory_space<vmem>>, vector<1x8x4xf32>
    %10 = vector.shape_cast %9 : vector<1x8x4xf32> to vector<8x4xf32>
    %11 = vector.broadcast %4 : vector<1x4xf32> to vector<8x4xf32>
    %12 = arith.mulf %6, %11 : vector<8x4xf32>
    %13 = vector.extract_strided_slice %8 {offsets = [7, 0], sizes = [1, 4], strides = [1, 1]} : vector<8x4xf32> to vector<1x4xf32>
    %14 = vector.extract_strided_slice %10 {offsets = [0, 0], sizes = [1, 4], strides = [1, 1]} : vector<8x4xf32> to vector<1x4xf32>
    %15 = tpu.concatenate %13, %6, %14 in 0 : vector<1x4xf32>, vector<8x4xf32>, vector<1x4xf32> -> vector<10x4xf32>
    %c0_10 = arith.constant 0 : index
    %c0_11 = arith.constant 0 : index
    %16 = vector.load %arg5[%c0_10, %c0_11] : memref<4x4xf32, #tpu.memory_space<vmem>>, vector<4x4xf32>
    %cst = arith.constant dense<0.000000e+00> : vector<10x4xf32>
    %17 = tpu.matmul %15, %16, %cst {dimension_numbers = #tpu.dot_dimension_numbers<[1], [0], [0], [1], [0, 0, 1, 1], [], []>} : vector<10x4xf32>, vector<4x4xf32>, vector<10x4xf32> -> vector<10x4xf32>
    %18 = vector.broadcast %1 : vector<1x4xf32> to vector<10x4xf32>
    %19 = arith.addf %17, %18 : vector<10x4xf32>
    %cst_12 = arith.constant 0.000000e+00 : f32
    %20 = vector.broadcast %cst_12 : f32 to vector<10x4xf32>
    %21 = arith.maximumf %19, %20 : vector<10x4xf32>
    %22 = tpu.iota {dimensions = array<i32: 0>} : vector<10x1xi32>
    %c0_i32 = arith.constant 0 : i32
    %23 = arith.cmpi eq, %arg1, %c0_i32 : i32
    %c0_i32_13 = arith.constant 0 : i32
    %24 = vector.broadcast %c0_i32_13 : i32 to vector<10x1xi32>
    %25 = arith.cmpi eq, %22, %24 : vector<10x1xi32>
    %26 = vector.broadcast %23 : i1 to vector<10x1xi1>
    %27 = arith.andi %26, %25 : vector<10x1xi1>
    %c1_i32 = arith.constant 1 : i32
    %28 = arith.cmpi eq, %arg1, %c1_i32 : i32
    %c9_i32 = arith.constant 9 : i32
    %29 = vector.broadcast %c9_i32 : i32 to vector<10x1xi32>
    %30 = arith.cmpi eq, %22, %29 : vector<10x1xi32>
    %31 = vector.broadcast %28 : i1 to vector<10x1xi1>
    %32 = arith.andi %31, %30 : vector<10x1xi1>
    %33 = arith.ori %27, %32 : vector<10x1xi1>
    %cst_14 = arith.constant dense<true> : vector<10x1xi1>
    %34 = arith.xori %33, %cst_14 : vector<10x1xi1>
    %35 = arith.extui %34 : vector<10x1xi1> to vector<10x1xi32>
    %36 = arith.sitofp %35 : vector<10x1xi32> to vector<10x1xf32>
    %37 = vector.broadcast %36 : vector<10x1xf32> to vector<10x4xf32>
    %38 = arith.mulf %21, %37 : vector<10x4xf32>
    %39 = vector.extract_strided_slice %38 {offsets = [0, 0], sizes = [8, 4], strides = [1, 1]} : vector<10x4xf32> to vector<8x4xf32>
    %40 = vector.extract_strided_slice %38 {offsets = [1, 0], sizes = [8, 4], strides = [1, 1]} : vector<10x4xf32> to vector<8x4xf32>
    %41 = vector.extract_strided_slice %38 {offsets = [2, 0], sizes = [8, 4], strides = [1, 1]} : vector<10x4xf32> to vector<8x4xf32>
    %42 = tpu.concatenate %39, %40, %41 in 1 : vector<8x4xf32>, vector<8x4xf32>, vector<8x4xf32> -> vector<8x12xf32>
    %c0_15 = arith.constant 0 : index
    %c0_16 = arith.constant 0 : index
    %43 = vector.load %arg6[%c0_15, %c0_16] : memref<12x4xf32, #tpu.memory_space<vmem>>, vector<12x4xf32>
    %cst_17 = arith.constant dense<0.000000e+00> : vector<8x4xf32>
    %44 = tpu.matmul %42, %43, %cst_17 {dimension_numbers = #tpu.dot_dimension_numbers<[1], [0], [0], [1], [0, 0, 1, 1], [], []>} : vector<8x12xf32>, vector<12x4xf32>, vector<8x4xf32> -> vector<8x4xf32>
    %45 = vector.broadcast %2 : vector<1x4xf32> to vector<8x4xf32>
    %46 = arith.addf %44, %45 : vector<8x4xf32>
    %cst_18 = arith.constant 0.000000e+00 : f32
    %47 = vector.broadcast %cst_18 : f32 to vector<8x4xf32>
    %48 = arith.maximumf %46, %47 : vector<8x4xf32>
    %c0_19 = arith.constant 0 : index
    %c0_20 = arith.constant 0 : index
    %49 = vector.load %arg7[%c0_19, %c0_20] : memref<4x4xf32, #tpu.memory_space<vmem>>, vector<4x4xf32>
    %cst_21 = arith.constant dense<0.000000e+00> : vector<8x4xf32>
    %50 = tpu.matmul %48, %49, %cst_21 {dimension_numbers = #tpu.dot_dimension_numbers<[1], [0], [0], [1], [0, 0, 1, 1], [], []>} : vector<8x4xf32>, vector<4x4xf32>, vector<8x4xf32> -> vector<8x4xf32>
    %51 = vector.broadcast %3 : vector<1x4xf32> to vector<8x4xf32>
    %52 = arith.addf %50, %51 : vector<8x4xf32>
    %53 = arith.addf %52, %12 : vector<8x4xf32>
    %cst_22 = arith.constant 0.000000e+00 : f32
    %54 = vector.broadcast %cst_22 : f32 to vector<8x4xf32>
    %55 = arith.maximumf %53, %54 : vector<8x4xf32>
    %c0_23 = arith.constant 0 : index
    %c0_24 = arith.constant 0 : index
    %c0_25 = arith.constant 0 : index
    %56 = vector.load %arg9[%c0_23, %c0_24, %c0_25] : memref<1x8x4xf32, #tpu.memory_space<vmem>>, vector<1x8x4xf32>
    %57 = vector.shape_cast %56 : vector<1x8x4xf32> to vector<8x4xf32>
    %58 = vector.shape_cast %55 : vector<8x4xf32> to vector<1x8x4xf32>
    tpu.vector_store %arg9[%c0_23, %c0_24, %c0_25], %58 {strides = array<i32>} : memref<1x8x4xf32, #tpu.memory_space<vmem>>, vector<1x8x4xf32>,
    return
  }
  func.func @transform_0(%arg0: i32, %arg1: i32) -> (i32, i32, i32) {
    %c0_i32 = arith.constant 0 : i32
    %c0_i32_0 = arith.constant 0 : i32
    return %arg0, %arg1, %c0_i32 : i32, i32, i32
  }
  func.func @transform_1(%arg0: i32, %arg1: i32) -> (i32, i32, i32) {
    %c1_i32 = arith.constant 1 : i32
    %0 = arith.muli %arg1, %c1_i32 : i32
    %c1_i32_0 = arith.constant 1 : i32
    %1 = arith.subi %0, %c1_i32_0 : i32
    %c0_i32 = arith.constant 0 : i32
    %2 = arith.maxsi %1, %c0_i32 : i32
    %c0_i32_1 = arith.constant 0 : i32
    %c0_i32_2 = arith.constant 0 : i32
    return %arg0, %2, %c0_i32_1 : i32, i32, i32
  }
  func.func @transform_2(%arg0: i32, %arg1: i32) -> (i32, i32, i32) {
    %c1_i32 = arith.constant 1 : i32
    %0 = arith.addi %arg1, %c1_i32 : i32
    %c1_i32_0 = arith.constant 1 : i32
    %1 = arith.muli %0, %c1_i32_0 : i32
    %c1_i32_1 = arith.constant 1 : i32
    %2 = arith.minsi %1, %c1_i32_1 : i32
    %c0_i32 = arith.constant 0 : i32
    %c0_i32_2 = arith.constant 0 : i32
    return %arg0, %2, %c0_i32 : i32, i32, i32
  }
  func.func @transform_3(%arg0: i32, %arg1: i32) -> (i32, i32) {
    %c0_i32 = arith.constant 0 : i32
    %c0_i32_0 = arith.constant 0 : i32
    %c0_i32_1 = arith.constant 0 : i32
    return %c0_i32, %c0_i32_0 : i32, i32
  }
  func.func @transform_4(%arg0: i32, %arg1: i32) -> (i32, i32) {
    %c0_i32 = arith.constant 0 : i32
    %c0_i32_0 = arith.constant 0 : i32
    %c0_i32_1 = arith.constant 0 : i32
    return %c0_i32, %c0_i32_0 : i32, i32
  }
  func.func @transform_5(%arg0: i32, %arg1: i32) -> (i32, i32) {
    %c0_i32 = arith.constant 0 : i32
    %c0_i32_0 = arith.constant 0 : i32
    %c0_i32_1 = arith.constant 0 : i32
    return %c0_i32, %c0_i32_0 : i32, i32
  }
  func.func @transform_6(%arg0: i32, %arg1: i32) -> (i32, i32) {
    %c0_i32 = arith.constant 0 : i32
    %c0_i32_0 = arith.constant 0 : i32
    %c0_i32_1 = arith.constant 0 : i32
    return %c0_i32, %c0_i32_0 : i32, i32
  }
  func.func @transform_7(%arg0: i32, %arg1: i32) -> (i32, i32, i32) {
    %c0_i32 = arith.constant 0 : i32
    %c0_i32_0 = arith.constant 0 : i32
    return %arg0, %arg1, %c0_i32 : i32, i32, i32
  }
}

module attributes {stable_mosaic.version = 11 : i64} {
  func.func @_bottleneck_kernel(%arg0: i32, %arg1: i32, %arg2: memref<1x8x4xf32, #tpu.memory_space<vmem>>, %arg3: memref<1x8x4xf32, #tpu.memory_space<vmem>>, %arg4: memref<1x8x4xf32, #tpu.memory_space<vmem>>, %arg5: memref<4x4xf32, #tpu.memory_space<vmem>>, %arg6: memref<12x4xf32, #tpu.memory_space<vmem>>, %arg7: memref<4x4xf32, #tpu.memory_space<vmem>>, %arg8: memref<8x4xf32, #tpu.memory_space<vmem>>, %arg9: memref<1x8x4xf32, #tpu.memory_space<vmem>>) attributes {dimension_semantics = [#tpu.dimension_semantics<parallel>, #tpu.dimension_semantics<parallel>], iteration_bounds = array<i64: 2, 2>, scalar_prefetch = 0 : i64, scratch_operands = 0 : i64, tpu.core_type = #tpu.core_type<tc>, window_params = [{transform_indices = @transform_0, window_bounds = array<i64: 1, 8, 4>}, {transform_indices = @transform_1, window_bounds = array<i64: 1, 8, 4>}, {transform_indices = @transform_2, window_bounds = array<i64: 1, 8, 4>}, {pipeline_mode = #tpu.pipeline_mode<synchronous>, transform_indices = @transform_3, window_bounds = array<i64: 4, 4>}, {pipeline_mode = #tpu.pipeline_mode<synchronous>, transform_indices = @transform_4, window_bounds = array<i64: 12, 4>}, {pipeline_mode = #tpu.pipeline_mode<synchronous>, transform_indices = @transform_5, window_bounds = array<i64: 4, 4>}, {pipeline_mode = #tpu.pipeline_mode<synchronous>, transform_indices = @transform_6, window_bounds = array<i64: 8, 4>}, {transform_indices = @transform_7, window_bounds = array<i64: 1, 8, 4>}]} {
    %c0 = arith.constant 0 : index
    %c0_0 = arith.constant 0 : index
    %0 = vector.load %arg8[%c0, %c0_0] : memref<8x4xf32, #tpu.memory_space<vmem>>, vector<8x4xf32>
    %1 = vector.extract_strided_slice %0 {offsets = [0, 0], sizes = [1, 4], strides = [1, 1]} : vector<8x4xf32> to vector<1x4xf32>
    %2 = vector.extract_strided_slice %0 {offsets = [1, 0], sizes = [1, 4], strides = [1, 1]} : vector<8x4xf32> to vector<1x4xf32>
    %3 = vector.extract_strided_slice %0 {offsets = [2, 0], sizes = [1, 4], strides = [1, 1]} : vector<8x4xf32> to vector<1x4xf32>
    %4 = vector.extract_strided_slice %0 {offsets = [3, 0], sizes = [1, 4], strides = [1, 1]} : vector<8x4xf32> to vector<1x4xf32>
    %c0_1 = arith.constant 0 : index
    %c0_2 = arith.constant 0 : index
    %c0_3 = arith.constant 0 : index
    %5 = vector.load %arg2[%c0_1, %c0_2, %c0_3] : memref<1x8x4xf32, #tpu.memory_space<vmem>>, vector<1x8x4xf32>
    %6 = vector.shape_cast %5 : vector<1x8x4xf32> to vector<8x4xf32>
    %c0_4 = arith.constant 0 : index
    %c0_5 = arith.constant 0 : index
    %c0_6 = arith.constant 0 : index
    %7 = vector.load %arg3[%c0_4, %c0_5, %c0_6] : memref<1x8x4xf32, #tpu.memory_space<vmem>>, vector<1x8x4xf32>
    %8 = vector.shape_cast %7 : vector<1x8x4xf32> to vector<8x4xf32>
    %c0_7 = arith.constant 0 : index
    %c0_8 = arith.constant 0 : index
    %c0_9 = arith.constant 0 : index
    %9 = vector.load %arg4[%c0_7, %c0_8, %c0_9] : memref<1x8x4xf32, #tpu.memory_space<vmem>>, vector<1x8x4xf32>
    %10 = vector.shape_cast %9 : vector<1x8x4xf32> to vector<8x4xf32>
    %11 = vector.broadcast %4 : vector<1x4xf32> to vector<8x4xf32>
    %12 = arith.mulf %6, %11 : vector<8x4xf32>
    %13 = vector.extract_strided_slice %8 {offsets = [7, 0], sizes = [1, 4], strides = [1, 1]} : vector<8x4xf32> to vector<1x4xf32>
    %14 = vector.extract_strided_slice %10 {offsets = [0, 0], sizes = [1, 4], strides = [1, 1]} : vector<8x4xf32> to vector<1x4xf32>
    %15 = tpu.concatenate %13, %6, %14 in 0 : vector<1x4xf32>, vector<8x4xf32>, vector<1x4xf32> -> vector<10x4xf32>
    %c0_10 = arith.constant 0 : index
    %c0_11 = arith.constant 0 : index
    %16 = vector.load %arg5[%c0_10, %c0_11] : memref<4x4xf32, #tpu.memory_space<vmem>>, vector<4x4xf32>
    %cst = arith.constant dense<0.000000e+00> : vector<10x4xf32>
    %17 = tpu.matmul %15, %16, %cst {dimension_numbers = #tpu.dot_dimension_numbers<[1], [0], [0], [1], [0, 0, 1, 1], [], []>} : vector<10x4xf32>, vector<4x4xf32>, vector<10x4xf32> -> vector<10x4xf32>
    %18 = vector.broadcast %1 : vector<1x4xf32> to vector<10x4xf32>
    %19 = arith.addf %17, %18 : vector<10x4xf32>
    %cst_12 = arith.constant 0.000000e+00 : f32
    %20 = vector.broadcast %cst_12 : f32 to vector<10x4xf32>
    %21 = arith.maximumf %19, %20 : vector<10x4xf32>
    %22 = tpu.iota {dimensions = array<i32: 0>} : vector<10x1xi32>
    %c0_i32 = arith.constant 0 : i32
    %23 = arith.cmpi eq, %arg1, %c0_i32 : i32
    %c0_i32_13 = arith.constant 0 : i32
    %24 = vector.broadcast %c0_i32_13 : i32 to vector<10x1xi32>
    %25 = arith.cmpi eq, %22, %24 : vector<10x1xi32>
    %26 = vector.broadcast %23 : i1 to vector<10x1xi1>
    %27 = arith.andi %26, %25 : vector<10x1xi1>
    %c1_i32 = arith.constant 1 : i32
    %28 = arith.cmpi eq, %arg1, %c1_i32 : i32
    %c9_i32 = arith.constant 9 : i32
    %29 = vector.broadcast %c9_i32 : i32 to vector<10x1xi32>
    %30 = arith.cmpi eq, %22, %29 : vector<10x1xi32>
    %31 = vector.broadcast %28 : i1 to vector<10x1xi1>
    %32 = arith.andi %31, %30 : vector<10x1xi1>
    %33 = arith.ori %27, %32 : vector<10x1xi1>
    %cst_14 = arith.constant dense<true> : vector<10x1xi1>
    %34 = arith.xori %33, %cst_14 : vector<10x1xi1>
    %35 = arith.extui %34 : vector<10x1xi1> to vector<10x1xi32>
    %36 = arith.sitofp %35 : vector<10x1xi32> to vector<10x1xf32>
    %37 = vector.broadcast %36 : vector<10x1xf32> to vector<10x4xf32>
    %38 = arith.mulf %21, %37 : vector<10x4xf32>
    %39 = vector.extract_strided_slice %38 {offsets = [0, 0], sizes = [8, 4], strides = [1, 1]} : vector<10x4xf32> to vector<8x4xf32>
    %40 = vector.extract_strided_slice %38 {offsets = [1, 0], sizes = [8, 4], strides = [1, 1]} : vector<10x4xf32> to vector<8x4xf32>
    %41 = vector.extract_strided_slice %38 {offsets = [2, 0], sizes = [8, 4], strides = [1, 1]} : vector<10x4xf32> to vector<8x4xf32>
    %42 = tpu.concatenate %39, %40, %41 in 1 : vector<8x4xf32>, vector<8x4xf32>, vector<8x4xf32> -> vector<8x12xf32>
    %c0_15 = arith.constant 0 : index
    %c0_16 = arith.constant 0 : index
    %43 = vector.load %arg6[%c0_15, %c0_16] : memref<12x4xf32, #tpu.memory_space<vmem>>, vector<12x4xf32>
    %cst_17 = arith.constant dense<0.000000e+00> : vector<8x4xf32>
    %44 = tpu.matmul %42, %43, %cst_17 {dimension_numbers = #tpu.dot_dimension_numbers<[1], [0], [0], [1], [0, 0, 1, 1], [], []>} : vector<8x12xf32>, vector<12x4xf32>, vector<8x4xf32> -> vector<8x4xf32>
    %45 = vector.broadcast %2 : vector<1x4xf32> to vector<8x4xf32>
    %46 = arith.addf %44, %45 : vector<8x4xf32>
    %cst_18 = arith.constant 0.000000e+00 : f32
    %47 = vector.broadcast %cst_18 : f32 to vector<8x4xf32>
    %48 = arith.maximumf %46, %47 : vector<8x4xf32>
    %c0_19 = arith.constant 0 : index
    %c0_20 = arith.constant 0 : index
    %49 = vector.load %arg7[%c0_19, %c0_20] : memref<4x4xf32, #tpu.memory_space<vmem>>, vector<4x4xf32>
    %cst_21 = arith.constant dense<0.000000e+00> : vector<8x4xf32>
    %50 = tpu.matmul %48, %49, %cst_21 {dimension_numbers = #tpu.dot_dimension_numbers<[1], [0], [0], [1], [0, 0, 1, 1], [], []>} : vector<8x4xf32>, vector<4x4xf32>, vector<8x4xf32> -> vector<8x4xf32>
    %51 = vector.broadcast %3 : vector<1x4xf32> to vector<8x4xf32>
    %52 = arith.addf %50, %51 : vector<8x4xf32>
    %53 = arith.addf %52, %12 : vector<8x4xf32>
    %cst_22 = arith.constant 0.000000e+00 : f32
    %54 = vector.broadcast %cst_22 : f32 to vector<8x4xf32>
    %55 = arith.maximumf %53, %54 : vector<8x4xf32>
    %c0_23 = arith.constant 0 : index
    %c0_24 = arith.constant 0 : index
    %c0_25 = arith.constant 0 : index
    %56 = vector.load %arg9[%c0_23, %c0_24, %c0_25] : memref<1x8x4xf32, #tpu.memory_space<vmem>>, vector<1x8x4xf32>
    %57 = vector.shape_cast %56 : vector<1x8x4xf32> to vector<8x4xf32>
    %58 = vector.shape_cast %55 : vector<8x4xf32> to vector<1x8x4xf32>
    tpu.vector_store %arg9[%c0_23, %c0_24, %c0_25], %58 {strides = array<i32>} : memref<1x8x4xf32, #tpu.memory_space<vmem>>, vector<1x8x4xf32>,
    return
  }
  func.func @transform_0(%arg0: i32, %arg1: i32) -> (i32, i32, i32) {
    %c0_i32 = arith.constant 0 : i32
    %c0_i32_0 = arith.constant 0 : i32
    return %arg0, %arg1, %c0_i32 : i32, i32, i32
  }
  func.func @transform_1(%arg0: i32, %arg1: i32) -> (i32, i32, i32) {
    %c1_i32 = arith.constant 1 : i32
    %0 = arith.muli %arg1, %c1_i32 : i32
    %c1_i32_0 = arith.constant 1 : i32
    %1 = arith.subi %0, %c1_i32_0 : i32
    %c0_i32 = arith.constant 0 : i32
    %2 = arith.maxsi %1, %c0_i32 : i32
    %c0_i32_1 = arith.constant 0 : i32
    %c0_i32_2 = arith.constant 0 : i32
    return %arg0, %2, %c0_i32_1 : i32, i32, i32
  }
  func.func @transform_2(%arg0: i32, %arg1: i32) -> (i32, i32, i32) {
    %c1_i32 = arith.constant 1 : i32
    %0 = arith.addi %arg1, %c1_i32 : i32
    %c1_i32_0 = arith.constant 1 : i32
    %1 = arith.muli %0, %c1_i32_0 : i32
    %c1_i32_1 = arith.constant 1 : i32
    %2 = arith.minsi %1, %c1_i32_1 : i32
    %c0_i32 = arith.constant 0 : i32
    %c0_i32_2 = arith.constant 0 : i32
    return %arg0, %2, %c0_i32 : i32, i32, i32
  }
  func.func @transform_3(%arg0: i32, %arg1: i32) -> (i32, i32) {
    %c0_i32 = arith.constant 0 : i32
    %c0_i32_0 = arith.constant 0 : i32
    %c0_i32_1 = arith.constant 0 : i32
    return %c0_i32, %c0_i32_0 : i32, i32
  }
  func.func @transform_4(%arg0: i32, %arg1: i32) -> (i32, i32) {
    %c0_i32 = arith.constant 0 : i32
    %c0_i32_0 = arith.constant 0 : i32
    %c0_i32_1 = arith.constant 0 : i32
    return %c0_i32, %c0_i32_0 : i32, i32
  }
  func.func @transform_5(%arg0: i32, %arg1: i32) -> (i32, i32) {
    %c0_i32 = arith.constant 0 : i32
    %c0_i32_0 = arith.constant 0 : i32
    %c0_i32_1 = arith.constant 0 : i32
    return %c0_i32, %c0_i32_0 : i32, i32
  }
  func.func @transform_6(%arg0: i32, %arg1: i32) -> (i32, i32) {
    %c0_i32 = arith.constant 0 : i32
    %c0_i32_0 = arith.constant 0 : i32
    %c0_i32_1 = arith.constant 0 : i32
    return %c0_i32, %c0_i32_0 : i32, i32
  }
  func.func @transform_7(%arg0: i32, %arg1: i32) -> (i32, i32, i32) {
    %c0_i32 = arith.constant 0 : i32
    %c0_i32_0 = arith.constant 0 : i32
    return %arg0, %arg1, %c0_i32 : i32, i32, i32
  }
}

</mosaic_0001>

<bundles_post_ra>
// kernel: tpu_custom_call.1
= control target key start
LH: loop header
LB: loop body
LE: loop exit
PB: predicated region body
PF: predicated region fallthrough
CT: control target
= control target key end

     0   :  { %s2209_s0 = inlined_call_operand.hbm [shape: f32[2,16,4], index: 0, kind: input, shape index: {}]   ;;  %s2210_s1 = inlined_call_operand.hbm [shape: f32[2,16,4], index: 1, kind: input, shape index: {}]   ;;  %s2211_s2 = inlined_call_operand.hbm [shape: f32[2,16,4], index: 2, kind: input, shape index: {}]   ;;  %s2212_s3 = inlined_call_operand.hbm [shape: f32[4,4], index: 3, kind: input, shape index: {}]   ;;  %s2213_s4 = inlined_call_operand.hbm [shape: f32[12,4], index: 4, kind: input, shape index: {}]   ;;  %s2214_s5 = inlined_call_operand.hbm [shape: f32[4,4], index: 5, kind: input, shape index: {}]   ;;  %s2215_s6 = inlined_call_operand.hbm [shape: f32[8,4], index: 6, kind: input, shape index: {}]   ;;  %s2216_s7 = inlined_call_operand.hbm [shape: f32[2,16,4], index: 7, kind: output, shape index: {}]  }
   0x1   :  { %2239 = sst [smem:[#allocation31_spill]] %s2209_s0 }
   0x2   :  { %2240 = sst [smem:[#allocation32_spill]] %s2210_s1 }
   0x3   :  { %2241 = sst [smem:[#allocation33_spill]] %s2211_s2 }
   0x4   :  { %2242 = sst [smem:[#allocation34_spill]] %s2212_s3 }
   0x5   :  { %2243 = sst [smem:[#allocation35_spill]] %s2214_s5 }
   0x6   :  { %2244 = sst [smem:[#allocation36_spill]] %s2216_s7 }
   0x7   :  { %12 = vsyncpa [#allocation3], 0 }
   0x8   :  { %14 = vsyncpa [#allocation3 + $0x1], 0 }
   0x9   :  { %15 = vsyncpa [#allocation6], 0 }
   0xa   :  { %17 = vsyncpa [#allocation6 + $0x1], 0 }
   0xb   :  { %18 = vsyncpa [#allocation9], 0 }
   0xc   :  { %19 = vsyncpa [#allocation12], 0 }
   0xd   :  { %20 = vsyncpa [#allocation4], 0 }
   0xe   :  { %22 = vsyncpa [#allocation4 + $0x1], 0  ;;  %s1666_s24 = smov 0   ;;  %s1668_s25 = smov 0  }
   0xf   :  { %s1670_s26 = smov 0   ;;  %s1672_s27 = smov 0  }
  0x10   :  { %s1674_s28 = smov 0   ;;  %s1676_s29 = smov 0  }
  0x11   :  { %s1678_s30 = smov 0   ;;  %s1680_s8 = smov 0  }
  0x12   :  { %s1682_s9 = smov 0   ;;  %s1684_s10 = smov 0  }
  0x13   :  { %s1686_s11 = smov 0   ;;  %s1688_s12 = smov 0  }
  0x14   :  { %s1690_s13 = smov 0   ;;  %s1692_s14 = smov 0  }
  0x15 LB: > { %2245 = sst [smem:[#allocation21_spill]] %s1556_s24  ;;  %s1737_s15 = sadd.s32 4294967295, %s1608_s14   ;;  %s1608_s14 = sphi %s1692_s14, %s28_s14   ;;  %s1604_s13 = sphi %s1690_s13, %s2318_s13   ;;  %s1600_s12 = sphi %s1688_s12, %s2317_s12   ;;  %s1596_s11 = sphi %s1686_s11, %s2316_s11   ;;  %s1592_s10 = sphi %s1684_s10, %s2315_s10   ;;  %s1588_s9 = sphi %s1682_s9, %s2314_s9   ;;  %s1584_s8 = sphi %s1680_s8, %s2313_s8   ;;  %s1580_s30 = sphi %s1678_s30, %s2312_s30   ;;  %s1576_s29 = sphi %s1676_s29, %s2306_s29   ;;  %s1572_s28 = sphi %s1674_s28, %s2305_s28   ;;  %s1568_s27 = sphi %s1672_s27, %s2304_s27   ;;  %s1564_s26 = sphi %s1670_s26, %s2311_s26   ;;  %s1560_s25 = sphi %s1668_s25, %s2310_s25   ;;  %s1556_s24 = sphi %s1666_s24, %s2309_s24  }
  0x16   : > { %2246 = sst [smem:[#allocation22_spill]] %s1572_s28  ;;  %p987_p0 = scmp.ge.s32.totalorder %s1608_s14, 1 }
  0x17   : > { %2247 = sst [smem:[#allocation23_spill]] %s1576_s29  ;;  %p2220_p1 = scmp.eq.s32.totalorder %s1737_s15, 0 }
  0x18   : > { %2248 = sst [smem:[#allocation24_spill]] %s1592_s10  ;;  %p253_p2 = scmp.lt.s32.totalorder %s1608_s14, 5 }
  0x19   : > { %2249 = sst [smem:[#allocation25_spill]] %s1596_s11  ;;  %s1610_s17 = smov [#allocation8]  }
  0x1a   : > { %p1742_p3 = pnand %p987_p0, %p253_p2  ;;  %s266_s18 = sshll.u32 %s1610_s17, 4  ;;  %s267_s18 = int_to_ptr.vmem [resolvable:$true] %s266_s18 }
  0x1b   : > { %s1611_s19 = smov [#allocation11]   ;;  %s2253_s3 = sld [smem:[#allocation34_spill]] }
  0x1c   : > { %s2250_s16 = scalar_select %p1742_p3, 1, 0 }
  0x1d   : > { %p1079_p4 = pneg %p1742_p3  ;;  %s290_s20 = sshll.u32 %s1611_s19, 4  ;;  %s1754_s20 = int_to_ptr.vmem [resolvable:$true] %s290_s20 }
  0x1e   : > { %2251 = sst [smem:[#allocation26_spill]] %s2250_s16 }
  0x1f   : > { %p1750_p5 = pnand %p1079_p4, %p2220_p1 }
  0x21   : > { %s2252_s21 = scalar_select %p1750_p5, 1, 0 }
  0x22   : > { %s1240_s7 = scalar_lea.hbm %s2253_s3, 64  ;;  %p1764_p7 = pneg %p1750_p5 }
  0x23   : > { %p1241_p6 = scmp.ne.s32.totalorder %s2253_s3, %s1240_s7  ;;  %p1247_p10 = scmp.lt.u32.totalorder %s1240_s7, %s2253_s3 }
  0x25   : > { %p1243_p8 = pnand %p1764_p7, %p1241_p6 }
  0x27   : > { %p1244_p9 = pneg %p1243_p8 }
  0x29   : > { %p1249_p11 = pnand %p1247_p10, %p1244_p9 }
  0x2b   : > { %1252 = shalt.err (!%p1249_p11)
}
  0x2c   : > { %s1253_s22 = scalar_lea.vmem %s267_s18, 64  ;;  %p1261_p2 = scmp.lt.s32.totalorder %s267_s18, %s267_s18 }
  0x2d   : > { %p1254_p12 = scmp.ne.s32.totalorder %s267_s18, %s1253_s22  ;;  %p1262_p4 = scmp.lt.s32.totalorder %s1253_s22, %s1253_s22 }
  0x2f   : > { %p1256_p13 = pnand %p1254_p12, %p1764_p7  ;;  %p1263_p1 = por %p1262_p4, %p1261_p2 }
  0x31   : > { %p1257_p0 = pneg %p1256_p13 }
  0x33   : > { %p1264_p3 = pnand %p1263_p1, %p1257_p0 }
  0x35   : > { %1267 = shalt.err (!%p1264_p3)
}
  0x36   : > { %1082 = dma.hbm_to_vmem [thread:$0]  (!%p1750_p5), %s2253_s3, 64, %s267_s18, [#allocation9]  }
  0x37   : > { %s2255_s5 = sld [smem:[#allocation35_spill]] }
  0x3d   : > { %s1268_s23 = scalar_lea.hbm %s2255_s5, 64 }
  0x3e   : > { %p1269_p6 = scmp.ne.s32.totalorder %s2255_s5, %s1268_s23  ;;  %p1275_p1 = scmp.lt.u32.totalorder %s1268_s23, %s2255_s5 }
  0x40   : > { %p1271_p8 = pnand %p1269_p6, %p1764_p7 }
  0x42   : > { %p1272_p9 = pneg %p1271_p8 }
  0x44   : > { %p1277_p3 = pnand %p1275_p1, %p1272_p9 }
  0x46   : > { %1280 = shalt.err (!%p1277_p3)
}
  0x47   : > { %s1281_s18 = scalar_lea.vmem %s1754_s20, 64  ;;  %p1289_p13 = scmp.lt.s32.totalorder %s1754_s20, %s1754_s20 }
  0x48   : > { %p1282_p10 = scmp.ne.s32.totalorder %s1754_s20, %s1281_s18  ;;  %p1290_p0 = scmp.lt.s32.totalorder %s1281_s18, %s1281_s18 }
  0x4a   : > { %p1284_p11 = pnand %p1282_p10, %p1764_p7  ;;  %p1291_p2 = por %p1290_p0, %p1289_p13 }
  0x4c   : > { %p1285_p12 = pneg %p1284_p11 }
  0x4e   : > { %p1292_p4 = pnand %p1291_p2, %p1285_p12 }
  0x50   : > { %1295 = shalt.err (!%p1292_p4)
}
  0x51   : > { %1088 = dma.hbm_to_vmem [thread:$0]  (!%p1750_p5), %s2255_s5, 64, %s1754_s20, [#allocation12]  }
  0x52   : > { %s37_s10 = sadd.s32 1, %s1600_s12  ;;  %s40_s11 = sadd.s32 1, %s1604_s13 }
  0x53   : > { %p38_p6 = scmp.ge.s32.totalorder %s37_s10, 2  ;;  %p2231_p8 = scmp.eq.s32.totalorder %s1608_s14, 0 }
  0x54   : > { %s83_s7 = sadd.s32 1, %s1576_s29  ;;  %p90_p1 = scmp.ne.s32.totalorder %s1576_s29, %s1572_s28 }
  0x55   : > { %s2320_s10 = smov (%p38_p6, %s37_s10), 0  ;;  %s2322_s11 = smov (!%p38_p6, %s40_s11), %s1604_s13 }
  0x56   : > { %2256 = sst [smem:[#allocation27_spill]] %s2320_s10  ;;  %s45_s16 = ssub.s32 %s1600_s12, %s2320_s10 }
  0x57   : > { %p42_p9 = scmp.ge.s32.totalorder %s2322_s11, 2  ;;  %p96_p3 = scmp.ne.s32.totalorder %s1572_s28, %s1568_s27 }
  0x58   : > { %p1827_p10 = por %p90_p1, %p2231_p8  ;;  %p2259_p12 = scmp.eq.s32.totalorder %s1737_s15, 0 }
  0x59   : > { %s2324_s11 = smov (%p42_p9, %s2322_s11), 0  ;;  %p2230_p0 = scmp.lt.s32.totalorder %s1608_s14, 4 }
  0x5a   : > { %2257 = sst [smem:[#allocation28_spill]] %s2324_s11  ;;  %s1818_s20 = ssub.s32 %s1604_s13, %s2324_s11 }
  0x5b   : > { %s1823_s23 = sor.u32 %s45_s16, %s1818_s20  ;;  %p1834_p13 = por %p96_p3, %p2259_p12 }
  0x5c   : > { %s332_s2 = sand.u32 1, %s1608_s14   ;;  %p2229_p2 = scmp.eq.s32.totalorder %s1818_s20, 0 }
  0x5d   : > { %s2260_s22 = scalar_select %p1834_p13, 1, 0 }
  0x5e   : > { %s334_s27 = sand.u32 1, %s1576_s29   ;;  %s2227_s3 = sshll.u32 %s1604_s13, 8 }
  0x5f   : > { %2261 = sst [smem:[#allocation29_spill]] %s2260_s22  ;;  %s996_s24 = sshll.u32 %s334_s27, 3 }
  0x60   : > { %s1846_s16 = scalar_select %p2229_p2, %s1576_s29, %s83_s7  }
  0x61   : > { %s2263_s1 = sld [smem:[#allocation32_spill]]  ;;  %s336_s22 = scalar_lea.vmem [#allocation5], %s996_s24 }
  0x62   : > { %2262 = sst [smem:[#allocation30_spill]] %s1846_s16  ;;  %s348_s18 = sshll.u32 %s336_s22, 4  ;;  %s1856_s18 = int_to_ptr.vmem [resolvable:$true] %s348_s18 }
  0x63   : > { %p1862_p4 = pnand %p2230_p0, %p1827_p10  ;;  %s1612_s27 = smov [#allocation10]  }
  0x64   : > { %s1866_s5 = sshll.u32 %s1612_s27, 4  ;;  %s1868_s11 = scalar_lea.sflag [#allocation6], %s332_s2  ;;  %s277_s5 = int_to_ptr.vmem [resolvable:$true] %s1866_s5 }
  0x65   : > { %p1298_p9 = pneg %p1862_p4 }
  0x67   : > { %s1854_s10 = scalar_lea.hbm %s2263_s1, %s2227_s3  ;;  %s1301_s24 = scalar_lea.hbm %s2263_s1, 512 }
  0x68   : > { %s1296_s3 = scalar_lea.hbm %s1854_s10, 128  ;;  %p1302_p10 = scmp.lt.u32.totalorder %s1854_s10, %s2263_s1 }
  0x69   : > { %p1297_p6 = scmp.ne.s32.totalorder %s1854_s10, %s1296_s3  ;;  %p1303_p12 = scmp.lt.u32.totalorder %s1301_s24, %s1296_s3 }
  0x6a   : > { %p1305_p0 = scmp.lt.u32.totalorder %s1296_s3, %s1854_s10 }
  0x6b   : > { %p1299_p1 = pnand %p1298_p9, %p1297_p6  ;;  %p1304_p2 = por %p1303_p12, %p1302_p10 }
  0x6d   : > { %p1300_p3 = pneg %p1299_p1  ;;  %p1306_p8 = por %p1305_p0, %p1304_p2 }
  0x6f   : > { %p1307_p11 = pnand %p1306_p8, %p1300_p3 }
  0x71   : > { %1310 = shalt.err (!%p1307_p11)
}
  0x72   : > { %s1311_s2 = scalar_lea.vmem %s1856_s18, 128  ;;  %s1613_s27 = smov [#allocation5]  }
  0x73   : > { %p1312_p6 = scmp.ne.s32.totalorder %s1856_s18, %s1311_s2  ;;  %s1316_s19 = sshll.u32 %s1613_s27, 4  ;;  %s1317_s19 = int_to_ptr.vmem [resolvable:$false] %s1316_s19 }
  0x74   : > { %s1318_s29 = scalar_lea.vmem %s1317_s19, 256  ;;  %p1319_p5 = scmp.lt.s32.totalorder %s1856_s18, %s1317_s19 }
  0x75   : > { %p1314_p1 = pnand %p1312_p6, %p1298_p9  ;;  %p1320_p10 = scmp.lt.s32.totalorder %s1318_s29, %s1311_s2 }
  0x77   : > { %p1315_p13 = pneg %p1314_p1  ;;  %p1321_p12 = por %p1320_p10, %p1319_p5 }
  0x79   : > { %p1322_p0 = pnand %p1321_p12, %p1315_p13 }
  0x7b   : > { %1325 = shalt.err (!%p1322_p0)
}
  0x7c   : > { %1098 = dma.hbm_to_vmem [thread:$0]  (!%p1862_p4), %s1854_s10, 128, %s1856_s18, %s1868_s11  }
  0x7d   : > { %s1326_s22 = scalar_lea.hbm %s2213_s4, 256 }
  0x7e   : > { %p1327_p8 = scmp.ne.s32.totalorder %s2213_s4, %s1326_s22  ;;  %p1333_p13 = scmp.lt.u32.totalorder %s1326_s22, %s2213_s4 }
  0x80   : > { %p1329_p5 = pnand %p1327_p8, %p1764_p7 }
  0x82   : > { %p1330_p11 = pneg %p1329_p5 }
  0x84   : > { %p1335_p2 = pnand %p1333_p13, %p1330_p11 }
  0x86   : > { %1338 = shalt.err (!%p1335_p2)
}
  0x87   : > { %s1339_s19 = scalar_lea.vmem %s277_s5, 256  ;;  %p1347_p6 = scmp.lt.s32.totalorder %s277_s5, %s277_s5 }
  0x88   : > { %p1340_p4 = scmp.ne.s32.totalorder %s277_s5, %s1339_s19  ;;  %p1348_p1 = scmp.lt.s32.totalorder %s1339_s19, %s1339_s19 }
  0x8a   : > { %p1342_p9 = pnand %p1340_p4, %p1764_p7  ;;  %p1349_p10 = por %p1348_p1, %p1347_p6 }
  0x8c   : > { %p1343_p3 = pneg %p1342_p9 }
  0x8e   : > { %p1350_p12 = pnand %p1349_p10, %p1343_p3 }
  0x90   : > { %1353 = shalt.err (!%p1350_p12)
}
  0x91   : > { %s1614_s10 = smov 128   ;;  %s1615_s18 = smov 8  }
  0x92   : > { %p2265_p0 = scmp.ne.s32.totalorder %s2252_s21, 0  ;;  %s1616_s16 = smov [#allocation13]  }
  0x93   : > { %s301_s22 = sshll.u32 %s1616_s16, 4  ;;  %s1354_s2 = scalar_lea.hbm %s2215_s6, 128  ;;  %s302_s22 = int_to_ptr.vmem [resolvable:$true] %s301_s22 }
  0x94   : > { %1085 = dma.hbm_to_vmem [thread:$0]  (!%p2265_p0), %s2213_s4, 256, %s277_s5, [#allocation9], %s1614_s10, %s1614_s10, %s1615_s18  }
  0x95   : > { %p1355_p8 = scmp.ne.s32.totalorder %s2215_s6, %s1354_s2  ;;  %p1361_p13 = scmp.lt.u32.totalorder %s1354_s2, %s2215_s6 }
  0x97   : > { %p1357_p5 = pnand %p1355_p8, %p1764_p7 }
  0x99   : > { %p1358_p11 = pneg %p1357_p5 }
  0x9b   : > { %p1363_p2 = pnand %p1361_p13, %p1358_p11 }
  0x9d   : > { %1366 = shalt.err (!%p1363_p2)
}
  0x9e   : > { %s1367_s5 = scalar_lea.vmem %s302_s22, 128  ;;  %p1375_p6 = scmp.lt.s32.totalorder %s302_s22, %s302_s22 }
  0x9f   : > { %p1368_p4 = scmp.ne.s32.totalorder %s302_s22, %s1367_s5  ;;  %p1376_p1 = scmp.lt.s32.totalorder %s1367_s5, %s1367_s5 }
  0xa1   : > { %p1370_p9 = pnand %p1368_p4, %p1764_p7  ;;  %p1377_p10 = por %p1376_p1, %p1375_p6 }
  0xa3   : > { %p1371_p3 = pneg %p1370_p9 }
  0xa5   : > { %p1378_p12 = pnand %p1377_p10, %p1371_p3 }
  0xa7   : > { %1381 = shalt.err (!%p1378_p12)
}
  0xa8   : > { %1091 = dma.hbm_to_vmem [thread:$0]  (!%p2265_p0), %s2215_s6, 128, %s302_s22, [#allocation12]  }
  0xa9   : > { %s984_s1 = sadd.s32 4294967294, %s1608_s14   ;;  %s49_s28 = sadd.s32 1, %s1588_s9 }
  0xaa   : > { %p56_p7 = scmp.ne.s32.totalorder %s1588_s9, %s1584_s8  ;;  %p2266_p8 = scmp.eq.s32.totalorder %s1823_s23, 0 }
  0xab   : > { %p2267_p5 = scmp.eq.s32.totalorder %s1608_s14, 0  ;;  %p62_p13 = scmp.ne.s32.totalorder %s1584_s8, %s1580_s30 }
  0xac   : > { %s1940_s21 = scalar_select %p2266_p8, %s1588_s9, %s49_s28  }
  0xad   : > { %p1944_p11 = por %p2267_p5, %p56_p7  ;;  %p240_p2 = scmp.eq.s32.totalorder %s1737_s15, 3 }
  0xae   : > { %p246_p4 = scmp.eq.s32.totalorder %s984_s1, 3  ;;  %p2269_p9 = scmp.eq.s32.totalorder %s1737_s15, 0 }
  0xaf   : > { %s312_s3 = sand.u32 1, %s1588_s9   ;;  %p1958_p0 = por %p240_p2, %p56_p7 }
  0xb0   : > { %p1953_p3 = por %p2269_p9, %p62_p13  ;;  %p1962_p6 = por %p246_p4, %p62_p13 }
  0xb1   : > { %s2271_s23 = scalar_select %p1958_p0, 1, 0 }
  0xb2   : > { %s2272_s16 = scalar_select %p1962_p6, 1, 0 }
  0xb3   : > { %s993_s22 = sshll.u32 %s312_s3, 3  ;;  %s2273_s24 = sshll.u32 %s1604_s13, 1 }
  0xb4   : > { %s321_s27 = sadd.s32 %s1600_s12, %s2273_s24  ;;  %s316_s7 = scalar_lea.vmem [#allocation2], %s993_s22 }
  0xb5   : > { %s995_s2 = sshll.u32 %s321_s27, 7  ;;  %s325_s19 = sshll.u32 %s316_s7, 4  ;;  %s1974_s19 = int_to_ptr.vmem [resolvable:$true] %s325_s19 }
  0xb6   : > { %s2274_s0 = sld [smem:[#allocation31_spill]]  ;;  %p2275_p1 = scmp.lt.s32.totalorder %s1608_s14, 4 }
  0xb7   : > { %s313_s28 = scalar_lea.sflag [#allocation3], %s312_s3 }
  0xb8   : > { %p1980_p10 = pnand %p2275_p1, %p1944_p11 }
  0xba   : > { %p1384_p7 = pneg %p1980_p10 }
  0xbc   : > { %s1972_s18 = scalar_lea.hbm %s2274_s0, %s995_s2  ;;  %s1387_s17 = scalar_lea.hbm %s2274_s0, 512 }
  0xbd   : > { %s1382_s22 = scalar_lea.hbm %s1972_s18, 128  ;;  %p1388_p11 = scmp.lt.u32.totalorder %s1972_s18, %s2274_s0 }
  0xbe   : > { %p1383_p12 = scmp.ne.s32.totalorder %s1972_s18, %s1382_s22  ;;  %p1389_p13 = scmp.lt.u32.totalorder %s1387_s17, %s1382_s22 }
  0xbf   : > { %p1391_p4 = scmp.lt.u32.totalorder %s1382_s22, %s1972_s18 }
  0xc0   : > { %p1385_p8 = pnand %p1384_p7, %p1383_p12  ;;  %p1390_p2 = por %p1389_p13, %p1388_p11 }
  0xc2   : > { %p1386_p5 = pneg %p1385_p8  ;;  %p1392_p9 = por %p1391_p4, %p1390_p2 }
  0xc4   : > { %p1393_p1 = pnand %p1392_p9, %p1386_p5 }
  0xc6   : > { %1396 = shalt.err (!%p1393_p1)
}
  0xc7   : > { %s1397_s3 = scalar_lea.vmem %s1974_s19, 128  ;;  %s1617_s5 = smov [#allocation2]  }
  0xc8   : > { %p1398_p12 = scmp.ne.s32.totalorder %s1974_s19, %s1397_s3  ;;  %s1402_s10 = sshll.u32 %s1617_s5, 4  ;;  %s1403_s10 = int_to_ptr.vmem [resolvable:$false] %s1402_s10 }
  0xc9   : > { %s1404_s24 = scalar_lea.vmem %s1403_s10, 256  ;;  %p1405_p0 = scmp.lt.s32.totalorder %s1974_s19, %s1403_s10 }
  0xca   : > { %p1400_p8 = pnand %p1398_p12, %p1384_p7  ;;  %p1406_p11 = scmp.lt.s32.totalorder %s1404_s24, %s1397_s3 }
  0xcc   : > { %p1401_p6 = pneg %p1400_p8  ;;  %p1407_p13 = por %p1406_p11, %p1405_p0 }
  0xce   : > { %p1408_p2 = pnand %p1407_p13, %p1401_p6 }
  0xd0   : > { %1411 = shalt.err (!%p1408_p2)
}
  0xd1   : > { %s2277_s22 = sld [smem:[#allocation21_spill]]  ;;  %s117_s27 = sadd.s32 1, %s1564_s26 }
  0xd2   : > { %1095 = dma.hbm_to_vmem [thread:$0]  (!%p1980_p10), %s1972_s18, 128, %s1974_s19, %s313_s28  }
  0xd3   : > { %p124_p0 = scmp.ne.s32.totalorder %s1564_s26, %s1560_s25  ;;  %s357_s17 = sand.u32 1, %s1564_s26  }
  0xd4   : > { %p2278_p7 = scmp.eq.s32.totalorder %s1608_s14, 0  ;;  %p2279_p4 = scmp.eq.s32.totalorder %s1737_s15, 0 }
  0xd5   : > { %s1000_s2 = sshll.u32 %s357_s17, 3  ;;  %p2281_p1 = scmp.eq.s32.totalorder %s1818_s20, 0 }
  0xd6   : > { %p126_p5 = por %p124_p0, %p2278_p7  ;;  %s2282_s3 = sshll.u32 %s1604_s13, 8 }
  0xd7   : > { %p130_p6 = scmp.ne.s32.totalorder %s1560_s25, %s2277_s22  ;;  %s1552_s5 = sadd.s32 128, %s2282_s3 }
  0xd8   : > { %s2026_s7 = scalar_select %p2281_p1, %s1564_s26, %s117_s27  }
  0xd9   : > { %p2019_p9 = por %p130_p6, %p2279_p4  ;;  %s2283_s19 = sld [smem:[#allocation33_spill]] }
  0xda   : > { %s359_s28 = scalar_lea.vmem [#allocation7], %s1000_s2  ;;  %p2284_p10 = scmp.lt.s32.totalorder %s1608_s14, 4 }
  0xdb   : > { %s2280_s1 = scalar_select %p2019_p9, 1, 0 }
  0xdc   : > { %s371_s22 = sshll.u32 %s359_s28, 4  ;;  %p2039_p12 = pnand %p2284_p10, %p126_p5  ;;  %s2035_s22 = int_to_ptr.vmem [resolvable:$true] %s371_s22 }
  0xde   : > { %p1414_p11 = pneg %p2039_p12 }
  0xdf   : > { %s2033_s18 = scalar_lea.hbm %s2283_s19, %s1552_s5  ;;  %s1417_s3 = scalar_lea.hbm %s2283_s19, 512 }
  0xe0   : > { %s1412_s27 = scalar_lea.hbm %s2033_s18, 128  ;;  %p1418_p0 = scmp.lt.u32.totalorder %s2033_s18, %s2283_s19 }
  0xe1   : > { %p1413_p8 = scmp.ne.s32.totalorder %s2033_s18, %s1412_s27  ;;  %p1419_p6 = scmp.lt.u32.totalorder %s1417_s3, %s1412_s27 }
  0xe2   : > { %p1421_p5 = scmp.lt.u32.totalorder %s1412_s27, %s2033_s18 }
  0xe3   : > { %p1415_p13 = pnand %p1414_p11, %p1413_p8  ;;  %p1420_p7 = por %p1419_p6, %p1418_p0 }
  0xe5   : > { %p1416_p2 = pneg %p1415_p13  ;;  %p1422_p4 = por %p1421_p5, %p1420_p7 }
  0xe7   : > { %p1423_p1 = pnand %p1422_p4, %p1416_p2 }
  0xe9   : > { %1426 = shalt.err (!%p1423_p1)
}
  0xea   : > { %s1427_s24 = scalar_lea.vmem %s2035_s22, 128  ;;  %s1618_s28 = smov [#allocation7]  }
  0xeb   : > { %p1428_p10 = scmp.ne.s32.totalorder %s2035_s22, %s1427_s24  ;;  %s1432_s17 = sshll.u32 %s1618_s28, 4  ;;  %s1433_s17 = int_to_ptr.vmem [resolvable:$false] %s1432_s17 }
  0xec   : > { %s1434_s2 = scalar_lea.vmem %s1433_s17, 256  ;;  %p1435_p9 = scmp.lt.s32.totalorder %s2035_s22, %s1433_s17 }
  0xed   : > { %p1430_p8 = pnand %p1428_p10, %p1414_p11  ;;  %p1436_p0 = scmp.lt.s32.totalorder %s1434_s2, %s1427_s24 }
  0xef   : > { %p1431_p13 = pneg %p1430_p8  ;;  %p1437_p6 = por %p1436_p0, %p1435_p9 }
  0xf1   : > { %p1438_p7 = pnand %p1437_p6, %p1431_p13 }
  0xf3   : > { %1441 = shalt.err (!%p1438_p7)
}
  0xf4   : > { %1101 = dma.hbm_to_vmem [thread:$0]  (!%p2039_p12), %s2033_s18, 128, %s2035_s22, %s1868_s11  }
  0xf5   : > { %s2286_s27 = sld [smem:[#allocation26_spill]] }
  0xfb   : > { %p2287_p2 = scmp.ne.s32.totalorder %s2286_s27, 0 }
  0xfc   : > { %s2072_s3 = sand.u32 (!%p2287_p2), 1, %s1584_s8  }
  0xfd   : > { %380 = sbr.rel (%p2287_p2) target bundleno = 1077 (0x435), region = 48  ;;  %s2238_s5 = sshll.u32 (!%p2287_p2), %s2072_s3, 3 }
  0xfe   : > { %s383_s10 = scalar_lea.sflag (!%p2287_p2), [#allocation3], %s2072_s3  ;;  %s386_s24 = scalar_lea.vmem (!%p2287_p2), [#allocation2], %s2238_s5 }
 0x104   : > { %1527 = dma.done.wait (%p1953_p3), %s383_s10, 128  }
 0x105   : > { %1529 = vsyncadd (%p1953_p3), %s383_s10, 4294967168  ;;  %s2288_s11 = sld [smem:[#allocation22_spill]]  ;;  %s2289_s18 = sld [smem:[#allocation29_spill]] }
 0x106   : > { %s391_s22 = sand.u32 1, %s1737_s15  }
 0x107   : > { %s392_s17 = scalar_lea.sflag [#allocation6], %s391_s22 }
 0x10b   : > { %s393_s20 = sand.u32 1, %s2288_s11   ;;  %p2290_p9 = scmp.ne.s32.totalorder %s2289_s18, 0 }
 0x10c   : > { %s1005_s28 = sshll.u32 %s393_s20, 3 }
 0x10d   : > { %s395_s2 = scalar_lea.vmem [#allocation5], %s1005_s28 }
 0x10e   : > { %1531 = dma.done.wait (%p2290_p9), %s392_s17, 128  }
 0x10f   : > { %1533 = vsyncadd (%p2290_p9), %s392_s17, 4294967168  ;;  %s402_s27 = sand.u32 1, %s1560_s25   ;;  %p2291_p12 = scmp.ne.s32.totalorder %s2280_s1, 0 }
 0x110   : > { %s1006_s5 = sshll.u32 %s402_s27, 3 }
 0x111   : > { %s404_s0 = scalar_lea.vmem [#allocation7], %s1006_s5 }
 0x112   : > { %1535 = dma.done.wait (%p2291_p12), %s392_s17, 128  }
 0x113   : > { %1537 = vsyncadd (%p2291_p12), %s392_s17, 4294967168  ;;  %p2292_p3 = scmp.eq.s32.totalorder %s1737_s15, 0 }
 0x115   : > { %1539 = dma.done.wait (%p2292_p3), [#allocation9], 320   ;;  %p2293_p11 = pmov %p2292_p3 }
 0x116   : > { %p2294_p5 = pmov %p2292_p3 }
 0x117   : > { %1541 = vsyncadd (%p2293_p11), [#allocation9], 4294966976 }
 0x118   : > { %1543 = dma.done.wait (%p2294_p5), [#allocation12], 192   ;;  %p2295_p4 = pmov %p2292_p3 }
 0x119   : > { %vm500_vm0 = vcmask 1043456   ;;  %v488_v0 = vld [vmem:[#allocation8] sm:$0xf]  ;;  %v2101_v1 = vld [vmem:[%s386_s24] sm:$0xff]  ;;  %s2296_s29 = sld [smem:[#allocation24_spill]]  ;;  %vm485_vm1 = vcmask 1040384   ;;  %v471_v10 = vlaneseq }
 0x11a   : > { %1545 = vsyncadd (%p2295_p4), [#allocation12], 4294967104  ;;  %v469_v2 = vld [vmem:[%s395_s2] sm:$0xff]  ;;  %1034 = vmatprep.subr.msk.mxu0 %vm500_vm0, %v488_v0  ;;  %v480_v4 = vrot.slane %v2101_v1, 7  ;;  %vm493_vm2 = vcmask 31744   ;;  %v470_v5 = vld [vmem:[%s404_s0] sm:$0xff] }
 0x11b   : > { %v477_v3 = vrot.slane %v469_v2, 7  ;;  %1035 = vmatpush3.msk.msra.mxu0 %vm500_vm0, %v488_v0  ;;  %v483_v6 = vrot.slane %v470_v5, 7  ;;  %v1619_v9 = vmov 0.0   ;;  %v2110_v11 = vshrl.u32 %v471_v10, 7  ;;  %v467_v16 = vld [vmem:[#allocation13] sm:$0xff]  ;;  %v629_v18 = vld [vmem:[#allocation10] sm:$0xff] }
 0x11c   : > { %1046 = vmatprep.subr.mxu0 %v1619_v9  ;;  %v630_v19 = vld [vmem:[#allocation10 + $0x8] sm:$0xf]  ;;  %vm1620_vm9 = vmmov 1   ;;  %v1621_v21 = vmov 0.0|0.0   ;;  %vm1622_vm13 = vmmov 0   ;;  %vm612_vm14 = vcmask 1046528  }
 0x11d   : > { %v486_v7 = vsel %vm485_vm1, %v477_v3, %v480_v4  ;;  %v487_v8 = vsel %vm485_vm1, %v480_v4, %v483_v6  ;;  %v583_v12 = vadd.s32 8, %v2110_v11  ;;  %v491_v15 = vsub.s32 0, %v2110_v11  ;;  %vm1053_vm10 = vmpackc.low %vm500_vm0, %vm1620_vm9  ;;  %1051 = vmatprep.subr.bf16.mxu1 %v1621_v21  ;;  %1043 = vmatprep.mubr.msk.f32.mxu1 %vm1622_vm13, %v1619_v9  ;;  %s1623_s0 = smov 4   ;;  %s1624_s5 = smov 8   ;;  %v713_v42 = vld [vmem:[#allocation11] sm:$0xf] }
 0x11e   : > { %1036 = vmatprep.mubr.msk.f32.mxu0 %vm493_vm2, %v486_v7  ;;  %vm585_vm5 = vcmp.eq.s32.totalorder %v2110_v11, 0  ;;  %v1052_v20 = vpack.c.bf16 %v630_v19, %v629_v18  ;;  %vm619_vm15 = vcmask 1045504   ;;  %vm627_vm1 = vcmask 64512   ;;  %s2297_s10 = sld [smem:[#allocation25_spill]]  ;;  %s2298_s22 = sshll.u32 %s2072_s3, 3 }
 0x11f   : > { %1037 = vmatmul.mubr.msk.f32.vlgmr.msra.gmra.mrb[0].mxu0 %vm493_vm2, %v487_v8  ;;  %p592_p1 = scmp.eq.s32.totalorder %s2296_s29, 1  ;;  %p584_p10 = scmp.eq.s32.totalorder %s2296_s29, 0  ;;  %vm594_vm3 = vcmp.eq.s32.totalorder %v583_v12, 9  ;;  %v492_v17 = vrot.slane %v467_v16, %v491_v15  ;;  %v633_v43 = vsub.s32 1, %v2110_v11  ;;  %v473_v49 = vsub.s32 3, %v2110_v11 }
 0x120   : > { %1054 = vmatpush3.bf16.msk.msra.mxu1 %vm1053_vm10, %v1052_v20  ;;  %1048 = vmatprep.mubr.msk.f32.mxu0 %vm1622_vm13, %v1619_v9  ;;  %v716_v50 = vsub.s32 2, %v2110_v11  ;;  %s460_s20 = scalar_lea.vmem [#allocation14], %s2298_s22  ;;  %s2299_s27 = sld [smem:[#allocation36_spill]] }
 0x121   : > { %s595_s15 = scalar_select %p592_p1, 1, 0  ;;  %1047 = vmatpush3.msk.msra.mxu0 %vm500_vm0, %v713_v42  ;;  %v634_v44 = vrot.slane %v467_v16, %v633_v43  ;;  %v474_v51 = vrot.slane %v467_v16, %v473_v49 }
 0x122   : > { %s587_s1 = scalar_select %p584_p10, 1, 0  ;;  %v717_v52 = vrot.slane %v467_v16, %v716_v50 }
 0x123   : > { %v596_v13 = vstv %s595_s15  ;;  %v475_v53 = vmul.f32 %v474_v51, %v2101_v1  ;;  %s813_s28 = sshll.u32 %s460_s20, 4  ;;  %p2301_p13 = scmp.ne.s32.totalorder %s2271_s23, 0  ;;  %s2132_s28 = int_to_ptr.vmem [resolvable:$true] %s813_s28 }
 0x124   : > { %v588_v14 = vstv %s587_s1  ;;  %vm597_vm4 = vcmp.eq.s32.totalorder %v596_v13, 1  ;;  %s1022_s24 = sshll.u32 %s2297_s10, 1 }
 0x125   : > { %vm589_vm6 = vcmp.eq.s32.totalorder %v588_v14, 1  ;;  %vm599_vm7 = vmand %vm597_vm4, %vm594_vm3  ;;  %vm635_vm3 = vcmask 97280   ;;  %s809_s11 = sadd.s32 %s2296_s29, %s1022_s24  ;;  %s798_s29 = scalar_lea.sflag [#allocation4], %s2072_s3 }
 0x126   : > { %vm590_vm8 = vmand %vm589_vm6, %vm585_vm5  ;;  %s1023_s18 = sshll.u32 %s809_s11, 7  ;;  %s2300_s15 = smov %s2299_s27 }
 0x127   : > { %vm603_vm11 = vmxor %vm599_vm7, %vm1620_vm9  ;;  %s2130_s1 = scalar_lea.hbm %s2299_s27, %s1023_s18 }
 0x128   : > { %vm602_vm12 = vmxor %vm590_vm8, %vm1620_vm9  ;;  %v1016_v25 = vsel %vm603_vm11, 1.0, %v1619_v9 }
 0x129   : > { %v1015_v28 = vsel %vm602_vm12, 1.0, %v1619_v9 }
 0x1f2   : > { %v1038_v22 = vpop.f32.mrb[0].mxu0 }
 0x1f3   : > { %v576_v23 = vadd.f32 %v1038_v22, %v492_v17  ;;  %v570_v24 = vpop.f32.mrb[1].mxu0 }
 0x1f4   : > { %v571_v26 = vadd.f32 %v570_v24, %v492_v17 }
 0x1f5   : > { %v580_v27 = vmax.f32 %v576_v23, 0.0 }
 0x1f6   : > { %v579_v29 = vmax.f32 %v571_v26, 0.0 }
 0x1f7   : > { %v609_v30 = vmul.f32 %v1016_v25, %v580_v27 }
 0x1f8   : > { %v608_v31 = vmul.f32 %v1015_v28, %v579_v29 }
 0x1f9   : > { %v614_v32 = vrot.slane %v609_v30, 1  ;;  %v621_v34 = vrot.slane %v609_v30, 2 }
 0x1fa   : > { %v613_v33 = vrot.slane %v608_v31, 1  ;;  %v620_v36 = vrot.slane %v608_v31, 2 }
 0x1fc   : > { %v615_v35 = vsel %vm612_vm14, %v613_v33, %v614_v32  ;;  %v622_v37 = vsel %vm619_vm15, %v620_v36, %v621_v34 }
 0x1fd   : > { %616 = vrot.lane.b32.xlu0 %v615_v35, %s1623_s0  ;;  %s1442_s0 = scalar_lea.vmem %s2132_s28, 128 }
 0x1fe   : > { %p1443_p8 = scmp.ne.s32.totalorder %s2132_s28, %s1442_s0 }
 0x200   : > { %p1444_p0 = pnand %p1443_p8, %p2301_p13 }
 0x201   : > { %623 = vrot.lane.b32.xlu0 %v622_v37, %s1624_s5  ;;  %s1625_s5 = smov [#allocation14]  }
 0x202   : > { %p1445_p6 = pneg %p1444_p0  ;;  %s1446_s10 = sshll.u32 %s1625_s5, 4  ;;  %s1447_s10 = int_to_ptr.vmem [resolvable:$false] %s1446_s10 }
 0x203   : > { %s1448_s24 = scalar_lea.vmem %s1447_s10, 256  ;;  %p1449_p7 = scmp.lt.s32.totalorder %s2132_s28, %s1447_s10 }
 0x204   : > { %p1450_p2 = scmp.lt.s32.totalorder %s1448_s24, %s1442_s0 }
 0x206   : > { %p1451_p9 = por %p1450_p2, %p1449_p7 }
 0x208   : > { %p1452_p12 = pnand %p1451_p9, %p1445_p6 }
 0x26f   : > { %v617_v38 = vpop.permute.xlu0 %616 }
 0x270   : > { %v626_v39 = vsel %vm493_vm2, %v608_v31, %v617_v38 }
 0x273   : > { %v624_v40 = vpop.permute.xlu0 %623 }
 0x274   : > { %v628_v41 = vsel %vm627_vm1, %v626_v39, %v624_v40 }
 0x275   : > { %1044 = vmatmul.mubr.msk.f32.vlgmr.msra.gmra.mrb[0].mxu1 %vm635_vm3, %v628_v41 }
 0x348   : > { %v708_v45 = vpop.f32.mrb[0].mxu1 }
 0x349   : > { %v709_v46 = vadd.f32 %v708_v45, %v634_v44  ;;  %v1045_v47 = vpop.f32.mrb[1].mxu1 }
 0x34b   : > { %v712_v48 = vmax.f32 %v709_v46, 0.0 }
 0x34d   : > { %1049 = vmatmul.mubr.msk.f32.vlgmr.msra.gmra.mrb[2].mxu0 %vm493_vm2, %v712_v48 }
 0x420   : > { %v790_v54 = vpop.f32.mrb[2].mxu0 }
 0x421   : > { %v791_v55 = vadd.f32 %v790_v54, %v717_v52  ;;  %v1050_v56 = vpop.f32.mrb[3].mxu0 }
 0x423   : > { %v794_v57 = vadd.f32 %v791_v55, %v475_v53 }
 0x425   : > { %v795_v58 = vmax.f32 %v794_v57, 0.0 }
 0x427   : > { %796 = vst.msk [vmem:[%s460_s20] sm:$0xff] %vm493_vm2, %v795_v58 }
 0x428   : > { %1455 = shalt.err (!%p1452_p12)
}
 0x429   : > { %s1456_s3 = scalar_lea.hbm %s2130_s1, 128  ;;  %s1460_s22 = scalar_lea.hbm %s2300_s15, 512 }
 0x42a   : > { %p1457_p3 = scmp.ne.s32.totalorder %s2130_s1, %s1456_s3  ;;  %p1461_p4 = scmp.lt.u32.totalorder %s2130_s1, %s2300_s15 }
 0x42b   : > { %p1462_p1 = scmp.lt.u32.totalorder %s1460_s22, %s1456_s3  ;;  %p1464_p8 = scmp.lt.u32.totalorder %s1456_s3, %s2130_s1 }
 0x42c   : > { %p1458_p11 = pnand %p1457_p3, %p2301_p13 }
 0x42d   : > { %p1463_p10 = por %p1462_p1, %p1461_p4 }
 0x42e   : > { %p1459_p5 = pneg %p1458_p11 }
 0x42f   : > { %p1465_p0 = por %p1464_p8, %p1463_p10 }
 0x431   : > { %p1466_p6 = pnand %p1465_p0, %p1459_p5 }
 0x433   : > { %1469 = shalt.err (!%p1466_p6)
}
 0x434   : > { %1077 = dma.vmem_to_hbm [thread:$0]  (%p2301_p13), %s2132_s28, 128, %s2130_s1, %s798_s29  }
 0x435 PF: > { %p1115_p7 = scmp.ge.s32.totalorder %s1608_s14, 2  ;;  %s825_s2 = sand.u32 1, %s1580_s30  }
 0x436   : > { %p2302_p2 = scmp.ne.s32.totalorder %s2272_s16, 0  ;;  %s826_s27 = scalar_lea.sflag [#allocation4], %s825_s2 }
 0x438   : > { %p1103_p9 = pnand %p1115_p7, %p2302_p2 }
 0x43a   : > { %1547 = dma.done.wait (!%p1103_p9), %s826_s27, 128  }
 0x43b   : > { %1549 = vsyncadd (!%p1103_p9), %s826_s27, 4294967168  ;;  %s28_s14 = sadd.s32 1, %s1608_s14   ;;  %s2304_s27 = sld [smem:[#allocation22_spill]] }
 0x43c   : > { %p2162_p12 = scmp.ge.s32.totalorder %s28_s14, 6   ;;  %s2305_s28 = sld [smem:[#allocation23_spill]] }
 0x43d   : > { %s2306_s29 = sld [smem:[#allocation30_spill]]  ;;  %s2307_s23 = sld [smem:[#allocation27_spill]] }
 0x43e   : > { %s2308_s16 = sld [smem:[#allocation28_spill]]  ;;  %s2309_s24 = smov %s1560_s25 }
 0x43f   : > { %s2310_s25 = smov %s1564_s26  ;;  %s2311_s26 = smov %s2026_s7 }
 0x440   : > { %s2312_s30 = smov %s1584_s8  ;;  %s2313_s8 = smov %s1588_s9 }
 0x441   : > { %s2314_s9 = smov %s1940_s21  ;;  %s2315_s10 = smov %s1600_s12 }
 0x442   : > { %s2316_s11 = smov %s1604_s13  ;;  %27 = sbr.rel (!%p2162_p12) target bundleno = 21 (0x15), region = 133 }
 0x443   : > { %s2317_s12 = smov %s2307_s23 }
 0x444   : > { %s2318_s13 = smov %s2308_s16 }
 0x449   :  { %831 = vsyncpa [#allocation3], 1 }
 0x44a   :  { %833 = vsyncpa [#allocation3 + $0x1], 1 }
 0x44b   :  { %834 = vsyncpa [#allocation6], 1 }
 0x44c   :  { %836 = vsyncpa [#allocation6 + $0x1], 1 }
 0x44d   :  { %837 = vsyncpa [#allocation9], 1 }
 0x44e   :  { %838 = vsyncpa [#allocation12], 1 }
 0x44f   :  { %839 = vsyncpa [#allocation4], 1 }
 0x450   :  { %841 = vsyncpa [#allocation4 + $0x1], 1 }

// kernel: tpu_custom_call.1
= control target key start
LH: loop header
LB: loop body
LE: loop exit
PB: predicated region body
PF: predicated region fallthrough
CT: control target
= control target key end

     0   :  { %s2209_s0 = inlined_call_operand.hbm [shape: f32[2,16,4], index: 0, kind: input, shape index: {}]   ;;  %s2210_s1 = inlined_call_operand.hbm [shape: f32[2,16,4], index: 1, kind: input, shape index: {}]   ;;  %s2211_s2 = inlined_call_operand.hbm [shape: f32[2,16,4], index: 2, kind: input, shape index: {}]   ;;  %s2212_s3 = inlined_call_operand.hbm [shape: f32[4,4], index: 3, kind: input, shape index: {}]   ;;  %s2213_s4 = inlined_call_operand.hbm [shape: f32[12,4], index: 4, kind: input, shape index: {}]   ;;  %s2214_s5 = inlined_call_operand.hbm [shape: f32[4,4], index: 5, kind: input, shape index: {}]   ;;  %s2215_s6 = inlined_call_operand.hbm [shape: f32[8,4], index: 6, kind: input, shape index: {}]   ;;  %s2216_s7 = inlined_call_operand.hbm [shape: f32[2,16,4], index: 7, kind: output, shape index: {}]  }
   0x1   :  { %2239 = sst [smem:[#allocation31_spill]] %s2209_s0 }
   0x2   :  { %2240 = sst [smem:[#allocation32_spill]] %s2210_s1 }
   0x3   :  { %2241 = sst [smem:[#allocation33_spill]] %s2211_s2 }
   0x4   :  { %2242 = sst [smem:[#allocation34_spill]] %s2212_s3 }
   0x5   :  { %2243 = sst [smem:[#allocation35_spill]] %s2214_s5 }
   0x6   :  { %2244 = sst [smem:[#allocation36_spill]] %s2216_s7 }
   0x7   :  { %12 = vsyncpa [#allocation3], 0 }
   0x8   :  { %14 = vsyncpa [#allocation3 + $0x1], 0 }
   0x9   :  { %15 = vsyncpa [#allocation6], 0 }
   0xa   :  { %17 = vsyncpa [#allocation6 + $0x1], 0 }
   0xb   :  { %18 = vsyncpa [#allocation9], 0 }
   0xc   :  { %19 = vsyncpa [#allocation12], 0 }
   0xd   :  { %20 = vsyncpa [#allocation4], 0 }
   0xe   :  { %22 = vsyncpa [#allocation4 + $0x1], 0  ;;  %s1666_s24 = smov 0   ;;  %s1668_s25 = smov 0  }
   0xf   :  { %s1670_s26 = smov 0   ;;  %s1672_s27 = smov 0  }
  0x10   :  { %s1674_s28 = smov 0   ;;  %s1676_s29 = smov 0  }
  0x11   :  { %s1678_s30 = smov 0   ;;  %s1680_s8 = smov 0  }
  0x12   :  { %s1682_s9 = smov 0   ;;  %s1684_s10 = smov 0  }
  0x13   :  { %s1686_s11 = smov 0   ;;  %s1688_s12 = smov 0  }
  0x14   :  { %s1690_s13 = smov 0   ;;  %s1692_s14 = smov 0  }
  0x15 LB: > { %2245 = sst [smem:[#allocation21_spill]] %s1556_s24  ;;  %s1737_s15 = sadd.s32 4294967295, %s1608_s14   ;;  %s1608_s14 = sphi %s1692_s14, %s28_s14   ;;  %s1604_s13 = sphi %s1690_s13, %s2318_s13   ;;  %s1600_s12 = sphi %s1688_s12, %s2317_s12   ;;  %s1596_s11 = sphi %s1686_s11, %s2316_s11   ;;  %s1592_s10 = sphi %s1684_s10, %s2315_s10   ;;  %s1588_s9 = sphi %s1682_s9, %s2314_s9   ;;  %s1584_s8 = sphi %s1680_s8, %s2313_s8   ;;  %s1580_s30 = sphi %s1678_s30, %s2312_s30   ;;  %s1576_s29 = sphi %s1676_s29, %s2306_s29   ;;  %s1572_s28 = sphi %s1674_s28, %s2305_s28   ;;  %s1568_s27 = sphi %s1672_s27, %s2304_s27   ;;  %s1564_s26 = sphi %s1670_s26, %s2311_s26   ;;  %s1560_s25 = sphi %s1668_s25, %s2310_s25   ;;  %s1556_s24 = sphi %s1666_s24, %s2309_s24  }
  0x16   : > { %2246 = sst [smem:[#allocation22_spill]] %s1572_s28  ;;  %p987_p0 = scmp.ge.s32.totalorder %s1608_s14, 1 }
  0x17   : > { %2247 = sst [smem:[#allocation23_spill]] %s1576_s29  ;;  %p2220_p1 = scmp.eq.s32.totalorder %s1737_s15, 0 }
  0x18   : > { %2248 = sst [smem:[#allocation24_spill]] %s1592_s10  ;;  %p253_p2 = scmp.lt.s32.totalorder %s1608_s14, 5 }
  0x19   : > { %2249 = sst [smem:[#allocation25_spill]] %s1596_s11  ;;  %s1610_s17 = smov [#allocation8]  }
  0x1a   : > { %p1742_p3 = pnand %p987_p0, %p253_p2  ;;  %s266_s18 = sshll.u32 %s1610_s17, 4  ;;  %s267_s18 = int_to_ptr.vmem [resolvable:$true] %s266_s18 }
  0x1b   : > { %s1611_s19 = smov [#allocation11]   ;;  %s2253_s3 = sld [smem:[#allocation34_spill]] }
  0x1c   : > { %s2250_s16 = scalar_select %p1742_p3, 1, 0 }
  0x1d   : > { %p1079_p4 = pneg %p1742_p3  ;;  %s290_s20 = sshll.u32 %s1611_s19, 4  ;;  %s1754_s20 = int_to_ptr.vmem [resolvable:$true] %s290_s20 }
  0x1e   : > { %2251 = sst [smem:[#allocation26_spill]] %s2250_s16 }
  0x1f   : > { %p1750_p5 = pnand %p1079_p4, %p2220_p1 }
  0x21   : > { %s2252_s21 = scalar_select %p1750_p5, 1, 0 }
  0x22   : > { %s1240_s7 = scalar_lea.hbm %s2253_s3, 64  ;;  %p1764_p7 = pneg %p1750_p5 }
  0x23   : > { %p1241_p6 = scmp.ne.s32.totalorder %s2253_s3, %s1240_s7  ;;  %p1247_p10 = scmp.lt.u32.totalorder %s1240_s7, %s2253_s3 }
  0x25   : > { %p1243_p8 = pnand %p1764_p7, %p1241_p6 }
  0x27   : > { %p1244_p9 = pneg %p1243_p8 }
  0x29   : > { %p1249_p11 = pnand %p1247_p10, %p1244_p9 }
  0x2b   : > { %1252 = shalt.err (!%p1249_p11)
}
  0x2c   : > { %s1253_s22 = scalar_lea.vmem %s267_s18, 64  ;;  %p1261_p2 = scmp.lt.s32.totalorder %s267_s18, %s267_s18 }
  0x2d   : > { %p1254_p12 = scmp.ne.s32.totalorder %s267_s18, %s1253_s22  ;;  %p1262_p4 = scmp.lt.s32.totalorder %s1253_s22, %s1253_s22 }
  0x2f   : > { %p1256_p13 = pnand %p1254_p12, %p1764_p7  ;;  %p1263_p1 = por %p1262_p4, %p1261_p2 }
  0x31   : > { %p1257_p0 = pneg %p1256_p13 }
  0x33   : > { %p1264_p3 = pnand %p1263_p1, %p1257_p0 }
  0x35   : > { %1267 = shalt.err (!%p1264_p3)
}
  0x36   : > { %1082 = dma.hbm_to_vmem [thread:$0]  (!%p1750_p5), %s2253_s3, 64, %s267_s18, [#allocation9]  }
  0x37   : > { %s2255_s5 = sld [smem:[#allocation35_spill]] }
  0x3d   : > { %s1268_s23 = scalar_lea.hbm %s2255_s5, 64 }
  0x3e   : > { %p1269_p6 = scmp.ne.s32.totalorder %s2255_s5, %s1268_s23  ;;  %p1275_p1 = scmp.lt.u32.totalorder %s1268_s23, %s2255_s5 }
  0x40   : > { %p1271_p8 = pnand %p1269_p6, %p1764_p7 }
  0x42   : > { %p1272_p9 = pneg %p1271_p8 }
  0x44   : > { %p1277_p3 = pnand %p1275_p1, %p1272_p9 }
  0x46   : > { %1280 = shalt.err (!%p1277_p3)
}
  0x47   : > { %s1281_s18 = scalar_lea.vmem %s1754_s20, 64  ;;  %p1289_p13 = scmp.lt.s32.totalorder %s1754_s20, %s1754_s20 }
  0x48   : > { %p1282_p10 = scmp.ne.s32.totalorder %s1754_s20, %s1281_s18  ;;  %p1290_p0 = scmp.lt.s32.totalorder %s1281_s18, %s1281_s18 }
  0x4a   : > { %p1284_p11 = pnand %p1282_p10, %p1764_p7  ;;  %p1291_p2 = por %p1290_p0, %p1289_p13 }
  0x4c   : > { %p1285_p12 = pneg %p1284_p11 }
  0x4e   : > { %p1292_p4 = pnand %p1291_p2, %p1285_p12 }
  0x50   : > { %1295 = shalt.err (!%p1292_p4)
}
  0x51   : > { %1088 = dma.hbm_to_vmem [thread:$0]  (!%p1750_p5), %s2255_s5, 64, %s1754_s20, [#allocation12]  }
  0x52   : > { %s37_s10 = sadd.s32 1, %s1600_s12  ;;  %s40_s11 = sadd.s32 1, %s1604_s13 }
  0x53   : > { %p38_p6 = scmp.ge.s32.totalorder %s37_s10, 2  ;;  %p2231_p8 = scmp.eq.s32.totalorder %s1608_s14, 0 }
  0x54   : > { %s83_s7 = sadd.s32 1, %s1576_s29  ;;  %p90_p1 = scmp.ne.s32.totalorder %s1576_s29, %s1572_s28 }
  0x55   : > { %s2320_s10 = smov (%p38_p6, %s37_s10), 0  ;;  %s2322_s11 = smov (!%p38_p6, %s40_s11), %s1604_s13 }
  0x56   : > { %2256 = sst [smem:[#allocation27_spill]] %s2320_s10  ;;  %s45_s16 = ssub.s32 %s1600_s12, %s2320_s10 }
  0x57   : > { %p42_p9 = scmp.ge.s32.totalorder %s2322_s11, 2  ;;  %p96_p3 = scmp.ne.s32.totalorder %s1572_s28, %s1568_s27 }
  0x58   : > { %p1827_p10 = por %p90_p1, %p2231_p8  ;;  %p2259_p12 = scmp.eq.s32.totalorder %s1737_s15, 0 }
  0x59   : > { %s2324_s11 = smov (%p42_p9, %s2322_s11), 0  ;;  %p2230_p0 = scmp.lt.s32.totalorder %s1608_s14, 4 }
  0x5a   : > { %2257 = sst [smem:[#allocation28_spill]] %s2324_s11  ;;  %s1818_s20 = ssub.s32 %s1604_s13, %s2324_s11 }
  0x5b   : > { %s1823_s23 = sor.u32 %s45_s16, %s1818_s20  ;;  %p1834_p13 = por %p96_p3, %p2259_p12 }
  0x5c   : > { %s332_s2 = sand.u32 1, %s1608_s14   ;;  %p2229_p2 = scmp.eq.s32.totalorder %s1818_s20, 0 }
  0x5d   : > { %s2260_s22 = scalar_select %p1834_p13, 1, 0 }
  0x5e   : > { %s334_s27 = sand.u32 1, %s1576_s29   ;;  %s2227_s3 = sshll.u32 %s1604_s13, 8 }
  0x5f   : > { %2261 = sst [smem:[#allocation29_spill]] %s2260_s22  ;;  %s996_s24 = sshll.u32 %s334_s27, 3 }
  0x60   : > { %s1846_s16 = scalar_select %p2229_p2, %s1576_s29, %s83_s7  }
  0x61   : > { %s2263_s1 = sld [smem:[#allocation32_spill]]  ;;  %s336_s22 = scalar_lea.vmem [#allocation5], %s996_s24 }
  0x62   : > { %2262 = sst [smem:[#allocation30_spill]] %s1846_s16  ;;  %s348_s18 = sshll.u32 %s336_s22, 4  ;;  %s1856_s18 = int_to_ptr.vmem [resolvable:$true] %s348_s18 }
  0x63   : > { %p1862_p4 = pnand %p2230_p0, %p1827_p10  ;;  %s1612_s27 = smov [#allocation10]  }
  0x64   : > { %s1866_s5 = sshll.u32 %s1612_s27, 4  ;;  %s1868_s11 = scalar_lea.sflag [#allocation6], %s332_s2  ;;  %s277_s5 = int_to_ptr.vmem [resolvable:$true] %s1866_s5 }
  0x65   : > { %p1298_p9 = pneg %p1862_p4 }
  0x67   : > { %s1854_s10 = scalar_lea.hbm %s2263_s1, %s2227_s3  ;;  %s1301_s24 = scalar_lea.hbm %s2263_s1, 512 }
  0x68   : > { %s1296_s3 = scalar_lea.hbm %s1854_s10, 128  ;;  %p1302_p10 = scmp.lt.u32.totalorder %s1854_s10, %s2263_s1 }
  0x69   : > { %p1297_p6 = scmp.ne.s32.totalorder %s1854_s10, %s1296_s3  ;;  %p1303_p12 = scmp.lt.u32.totalorder %s1301_s24, %s1296_s3 }
  0x6a   : > { %p1305_p0 = scmp.lt.u32.totalorder %s1296_s3, %s1854_s10 }
  0x6b   : > { %p1299_p1 = pnand %p1298_p9, %p1297_p6  ;;  %p1304_p2 = por %p1303_p12, %p1302_p10 }
  0x6d   : > { %p1300_p3 = pneg %p1299_p1  ;;  %p1306_p8 = por %p1305_p0, %p1304_p2 }
  0x6f   : > { %p1307_p11 = pnand %p1306_p8, %p1300_p3 }
  0x71   : > { %1310 = shalt.err (!%p1307_p11)
}
  0x72   : > { %s1311_s2 = scalar_lea.vmem %s1856_s18, 128  ;;  %s1613_s27 = smov [#allocation5]  }
  0x73   : > { %p1312_p6 = scmp.ne.s32.totalorder %s1856_s18, %s1311_s2  ;;  %s1316_s19 = sshll.u32 %s1613_s27, 4  ;;  %s1317_s19 = int_to_ptr.vmem [resolvable:$false] %s1316_s19 }
  0x74   : > { %s1318_s29 = scalar_lea.vmem %s1317_s19, 256  ;;  %p1319_p5 = scmp.lt.s32.totalorder %s1856_s18, %s1317_s19 }
  0x75   : > { %p1314_p1 = pnand %p1312_p6, %p1298_p9  ;;  %p1320_p10 = scmp.lt.s32.totalorder %s1318_s29, %s1311_s2 }
  0x77   : > { %p1315_p13 = pneg %p1314_p1  ;;  %p1321_p12 = por %p1320_p10, %p1319_p5 }
  0x79   : > { %p1322_p0 = pnand %p1321_p12, %p1315_p13 }
  0x7b   : > { %1325 = shalt.err (!%p1322_p0)
}
  0x7c   : > { %1098 = dma.hbm_to_vmem [thread:$0]  (!%p1862_p4), %s1854_s10, 128, %s1856_s18, %s1868_s11  }
  0x7d   : > { %s1326_s22 = scalar_lea.hbm %s2213_s4, 256 }
  0x7e   : > { %p1327_p8 = scmp.ne.s32.totalorder %s2213_s4, %s1326_s22  ;;  %p1333_p13 = scmp.lt.u32.totalorder %s1326_s22, %s2213_s4 }
  0x80   : > { %p1329_p5 = pnand %p1327_p8, %p1764_p7 }
  0x82   : > { %p1330_p11 = pneg %p1329_p5 }
  0x84   : > { %p1335_p2 = pnand %p1333_p13, %p1330_p11 }
  0x86   : > { %1338 = shalt.err (!%p1335_p2)
}
  0x87   : > { %s1339_s19 = scalar_lea.vmem %s277_s5, 256  ;;  %p1347_p6 = scmp.lt.s32.totalorder %s277_s5, %s277_s5 }
  0x88   : > { %p1340_p4 = scmp.ne.s32.totalorder %s277_s5, %s1339_s19  ;;  %p1348_p1 = scmp.lt.s32.totalorder %s1339_s19, %s1339_s19 }
  0x8a   : > { %p1342_p9 = pnand %p1340_p4, %p1764_p7  ;;  %p1349_p10 = por %p1348_p1, %p1347_p6 }
  0x8c   : > { %p1343_p3 = pneg %p1342_p9 }
  0x8e   : > { %p1350_p12 = pnand %p1349_p10, %p1343_p3 }
  0x90   : > { %1353 = shalt.err (!%p1350_p12)
}
  0x91   : > { %s1614_s10 = smov 128   ;;  %s1615_s18 = smov 8  }
  0x92   : > { %p2265_p0 = scmp.ne.s32.totalorder %s2252_s21, 0  ;;  %s1616_s16 = smov [#allocation13]  }
  0x93   : > { %s301_s22 = sshll.u32 %s1616_s16, 4  ;;  %s1354_s2 = scalar_lea.hbm %s2215_s6, 128  ;;  %s302_s22 = int_to_ptr.vmem [resolvable:$true] %s301_s22 }
  0x94   : > { %1085 = dma.hbm_to_vmem [thread:$0]  (!%p2265_p0), %s2213_s4, 256, %s277_s5, [#allocation9], %s1614_s10, %s1614_s10, %s1615_s18  }
  0x95   : > { %p1355_p8 = scmp.ne.s32.totalorder %s2215_s6, %s1354_s2  ;;  %p1361_p13 = scmp.lt.u32.totalorder %s1354_s2, %s2215_s6 }
  0x97   : > { %p1357_p5 = pnand %p1355_p8, %p1764_p7 }
  0x99   : > { %p1358_p11 = pneg %p1357_p5 }
  0x9b   : > { %p1363_p2 = pnand %p1361_p13, %p1358_p11 }
  0x9d   : > { %1366 = shalt.err (!%p1363_p2)
}
  0x9e   : > { %s1367_s5 = scalar_lea.vmem %s302_s22, 128  ;;  %p1375_p6 = scmp.lt.s32.totalorder %s302_s22, %s302_s22 }
  0x9f   : > { %p1368_p4 = scmp.ne.s32.totalorder %s302_s22, %s1367_s5  ;;  %p1376_p1 = scmp.lt.s32.totalorder %s1367_s5, %s1367_s5 }
  0xa1   : > { %p1370_p9 = pnand %p1368_p4, %p1764_p7  ;;  %p1377_p10 = por %p1376_p1, %p1375_p6 }
  0xa3   : > { %p1371_p3 = pneg %p1370_p9 }
  0xa5   : > { %p1378_p12 = pnand %p1377_p10, %p1371_p3 }
  0xa7   : > { %1381 = shalt.err (!%p1378_p12)
}
  0xa8   : > { %1091 = dma.hbm_to_vmem [thread:$0]  (!%p2265_p0), %s2215_s6, 128, %s302_s22, [#allocation12]  }
  0xa9   : > { %s984_s1 = sadd.s32 4294967294, %s1608_s14   ;;  %s49_s28 = sadd.s32 1, %s1588_s9 }
  0xaa   : > { %p56_p7 = scmp.ne.s32.totalorder %s1588_s9, %s1584_s8  ;;  %p2266_p8 = scmp.eq.s32.totalorder %s1823_s23, 0 }
  0xab   : > { %p2267_p5 = scmp.eq.s32.totalorder %s1608_s14, 0  ;;  %p62_p13 = scmp.ne.s32.totalorder %s1584_s8, %s1580_s30 }
  0xac   : > { %s1940_s21 = scalar_select %p2266_p8, %s1588_s9, %s49_s28  }
  0xad   : > { %p1944_p11 = por %p2267_p5, %p56_p7  ;;  %p240_p2 = scmp.eq.s32.totalorder %s1737_s15, 3 }
  0xae   : > { %p246_p4 = scmp.eq.s32.totalorder %s984_s1, 3  ;;  %p2269_p9 = scmp.eq.s32.totalorder %s1737_s15, 0 }
  0xaf   : > { %s312_s3 = sand.u32 1, %s1588_s9   ;;  %p1958_p0 = por %p240_p2, %p56_p7 }
  0xb0   : > { %p1953_p3 = por %p2269_p9, %p62_p13  ;;  %p1962_p6 = por %p246_p4, %p62_p13 }
  0xb1   : > { %s2271_s23 = scalar_select %p1958_p0, 1, 0 }
  0xb2   : > { %s2272_s16 = scalar_select %p1962_p6, 1, 0 }
  0xb3   : > { %s993_s22 = sshll.u32 %s312_s3, 3  ;;  %s2273_s24 = sshll.u32 %s1604_s13, 1 }
  0xb4   : > { %s321_s27 = sadd.s32 %s1600_s12, %s2273_s24  ;;  %s316_s7 = scalar_lea.vmem [#allocation2], %s993_s22 }
  0xb5   : > { %s995_s2 = sshll.u32 %s321_s27, 7  ;;  %s325_s19 = sshll.u32 %s316_s7, 4  ;;  %s1974_s19 = int_to_ptr.vmem [resolvable:$true] %s325_s19 }
  0xb6   : > { %s2274_s0 = sld [smem:[#allocation31_spill]]  ;;  %p2275_p1 = scmp.lt.s32.totalorder %s1608_s14, 4 }
  0xb7   : > { %s313_s28 = scalar_lea.sflag [#allocation3], %s312_s3 }
  0xb8   : > { %p1980_p10 = pnand %p2275_p1, %p1944_p11 }
  0xba   : > { %p1384_p7 = pneg %p1980_p10 }
  0xbc   : > { %s1972_s18 = scalar_lea.hbm %s2274_s0, %s995_s2  ;;  %s1387_s17 = scalar_lea.hbm %s2274_s0, 512 }
  0xbd   : > { %s1382_s22 = scalar_lea.hbm %s1972_s18, 128  ;;  %p1388_p11 = scmp.lt.u32.totalorder %s1972_s18, %s2274_s0 }
  0xbe   : > { %p1383_p12 = scmp.ne.s32.totalorder %s1972_s18, %s1382_s22  ;;  %p1389_p13 = scmp.lt.u32.totalorder %s1387_s17, %s1382_s22 }
  0xbf   : > { %p1391_p4 = scmp.lt.u32.totalorder %s1382_s22, %s1972_s18 }
  0xc0   : > { %p1385_p8 = pnand %p1384_p7, %p1383_p12  ;;  %p1390_p2 = por %p1389_p13, %p1388_p11 }
  0xc2   : > { %p1386_p5 = pneg %p1385_p8  ;;  %p1392_p9 = por %p1391_p4, %p1390_p2 }
  0xc4   : > { %p1393_p1 = pnand %p1392_p9, %p1386_p5 }
  0xc6   : > { %1396 = shalt.err (!%p1393_p1)
}
  0xc7   : > { %s1397_s3 = scalar_lea.vmem %s1974_s19, 128  ;;  %s1617_s5 = smov [#allocation2]  }
  0xc8   : > { %p1398_p12 = scmp.ne.s32.totalorder %s1974_s19, %s1397_s3  ;;  %s1402_s10 = sshll.u32 %s1617_s5, 4  ;;  %s1403_s10 = int_to_ptr.vmem [resolvable:$false] %s1402_s10 }
  0xc9   : > { %s1404_s24 = scalar_lea.vmem %s1403_s10, 256  ;;  %p1405_p0 = scmp.lt.s32.totalorder %s1974_s19, %s1403_s10 }
  0xca   : > { %p1400_p8 = pnand %p1398_p12, %p1384_p7  ;;  %p1406_p11 = scmp.lt.s32.totalorder %s1404_s24, %s1397_s3 }
  0xcc   : > { %p1401_p6 = pneg %p1400_p8  ;;  %p1407_p13 = por %p1406_p11, %p1405_p0 }
  0xce   : > { %p1408_p2 = pnand %p1407_p13, %p1401_p6 }
  0xd0   : > { %1411 = shalt.err (!%p1408_p2)
}
  0xd1   : > { %s2277_s22 = sld [smem:[#allocation21_spill]]  ;;  %s117_s27 = sadd.s32 1, %s1564_s26 }
  0xd2   : > { %1095 = dma.hbm_to_vmem [thread:$0]  (!%p1980_p10), %s1972_s18, 128, %s1974_s19, %s313_s28  }
  0xd3   : > { %p124_p0 = scmp.ne.s32.totalorder %s1564_s26, %s1560_s25  ;;  %s357_s17 = sand.u32 1, %s1564_s26  }
  0xd4   : > { %p2278_p7 = scmp.eq.s32.totalorder %s1608_s14, 0  ;;  %p2279_p4 = scmp.eq.s32.totalorder %s1737_s15, 0 }
  0xd5   : > { %s1000_s2 = sshll.u32 %s357_s17, 3  ;;  %p2281_p1 = scmp.eq.s32.totalorder %s1818_s20, 0 }
  0xd6   : > { %p126_p5 = por %p124_p0, %p2278_p7  ;;  %s2282_s3 = sshll.u32 %s1604_s13, 8 }
  0xd7   : > { %p130_p6 = scmp.ne.s32.totalorder %s1560_s25, %s2277_s22  ;;  %s1552_s5 = sadd.s32 128, %s2282_s3 }
  0xd8   : > { %s2026_s7 = scalar_select %p2281_p1, %s1564_s26, %s117_s27  }
  0xd9   : > { %p2019_p9 = por %p130_p6, %p2279_p4  ;;  %s2283_s19 = sld [smem:[#allocation33_spill]] }
  0xda   : > { %s359_s28 = scalar_lea.vmem [#allocation7], %s1000_s2  ;;  %p2284_p10 = scmp.lt.s32.totalorder %s1608_s14, 4 }
  0xdb   : > { %s2280_s1 = scalar_select %p2019_p9, 1, 0 }
  0xdc   : > { %s371_s22 = sshll.u32 %s359_s28, 4  ;;  %p2039_p12 = pnand %p2284_p10, %p126_p5  ;;  %s2035_s22 = int_to_ptr.vmem [resolvable:$true] %s371_s22 }
  0xde   : > { %p1414_p11 = pneg %p2039_p12 }
  0xdf   : > { %s2033_s18 = scalar_lea.hbm %s2283_s19, %s1552_s5  ;;  %s1417_s3 = scalar_lea.hbm %s2283_s19, 512 }
  0xe0   : > { %s1412_s27 = scalar_lea.hbm %s2033_s18, 128  ;;  %p1418_p0 = scmp.lt.u32.totalorder %s2033_s18, %s2283_s19 }
  0xe1   : > { %p1413_p8 = scmp.ne.s32.totalorder %s2033_s18, %s1412_s27  ;;  %p1419_p6 = scmp.lt.u32.totalorder %s1417_s3, %s1412_s27 }
  0xe2   : > { %p1421_p5 = scmp.lt.u32.totalorder %s1412_s27, %s2033_s18 }
  0xe3   : > { %p1415_p13 = pnand %p1414_p11, %p1413_p8  ;;  %p1420_p7 = por %p1419_p6, %p1418_p0 }
  0xe5   : > { %p1416_p2 = pneg %p1415_p13  ;;  %p1422_p4 = por %p1421_p5, %p1420_p7 }
  0xe7   : > { %p1423_p1 = pnand %p1422_p4, %p1416_p2 }
  0xe9   : > { %1426 = shalt.err (!%p1423_p1)
}
  0xea   : > { %s1427_s24 = scalar_lea.vmem %s2035_s22, 128  ;;  %s1618_s28 = smov [#allocation7]  }
  0xeb   : > { %p1428_p10 = scmp.ne.s32.totalorder %s2035_s22, %s1427_s24  ;;  %s1432_s17 = sshll.u32 %s1618_s28, 4  ;;  %s1433_s17 = int_to_ptr.vmem [resolvable:$false] %s1432_s17 }
  0xec   : > { %s1434_s2 = scalar_lea.vmem %s1433_s17, 256  ;;  %p1435_p9 = scmp.lt.s32.totalorder %s2035_s22, %s1433_s17 }
  0xed   : > { %p1430_p8 = pnand %p1428_p10, %p1414_p11  ;;  %p1436_p0 = scmp.lt.s32.totalorder %s1434_s2, %s1427_s24 }
  0xef   : > { %p1431_p13 = pneg %p1430_p8  ;;  %p1437_p6 = por %p1436_p0, %p1435_p9 }
  0xf1   : > { %p1438_p7 = pnand %p1437_p6, %p1431_p13 }
  0xf3   : > { %1441 = shalt.err (!%p1438_p7)
}
  0xf4   : > { %1101 = dma.hbm_to_vmem [thread:$0]  (!%p2039_p12), %s2033_s18, 128, %s2035_s22, %s1868_s11  }
  0xf5   : > { %s2286_s27 = sld [smem:[#allocation26_spill]] }
  0xfb   : > { %p2287_p2 = scmp.ne.s32.totalorder %s2286_s27, 0 }
  0xfc   : > { %s2072_s3 = sand.u32 (!%p2287_p2), 1, %s1584_s8  }
  0xfd   : > { %380 = sbr.rel (%p2287_p2) target bundleno = 1077 (0x435), region = 48  ;;  %s2238_s5 = sshll.u32 (!%p2287_p2), %s2072_s3, 3 }
  0xfe   : > { %s383_s10 = scalar_lea.sflag (!%p2287_p2), [#allocation3], %s2072_s3  ;;  %s386_s24 = scalar_lea.vmem (!%p2287_p2), [#allocation2], %s2238_s5 }
 0x104   : > { %1527 = dma.done.wait (%p1953_p3), %s383_s10, 128  }
 0x105   : > { %1529 = vsyncadd (%p1953_p3), %s383_s10, 4294967168  ;;  %s2288_s11 = sld [smem:[#allocation22_spill]]  ;;  %s2289_s18 = sld [smem:[#allocation29_spill]] }
 0x106   : > { %s391_s22 = sand.u32 1, %s1737_s15  }
 0x107   : > { %s392_s17 = scalar_lea.sflag [#allocation6], %s391_s22 }
 0x10b   : > { %s393_s20 = sand.u32 1, %s2288_s11   ;;  %p2290_p9 = scmp.ne.s32.totalorder %s2289_s18, 0 }
 0x10c   : > { %s1005_s28 = sshll.u32 %s393_s20, 3 }
 0x10d   : > { %s395_s2 = scalar_lea.vmem [#allocation5], %s1005_s28 }
 0x10e   : > { %1531 = dma.done.wait (%p2290_p9), %s392_s17, 128  }
 0x10f   : > { %1533 = vsyncadd (%p2290_p9), %s392_s17, 4294967168  ;;  %s402_s27 = sand.u32 1, %s1560_s25   ;;  %p2291_p12 = scmp.ne.s32.totalorder %s2280_s1, 0 }
 0x110   : > { %s1006_s5 = sshll.u32 %s402_s27, 3 }
 0x111   : > { %s404_s0 = scalar_lea.vmem [#allocation7], %s1006_s5 }
 0x112   : > { %1535 = dma.done.wait (%p2291_p12), %s392_s17, 128  }
 0x113   : > { %1537 = vsyncadd (%p2291_p12), %s392_s17, 4294967168  ;;  %p2292_p3 = scmp.eq.s32.totalorder %s1737_s15, 0 }
 0x115   : > { %1539 = dma.done.wait (%p2292_p3), [#allocation9], 320   ;;  %p2293_p11 = pmov %p2292_p3 }
 0x116   : > { %p2294_p5 = pmov %p2292_p3 }
 0x117   : > { %1541 = vsyncadd (%p2293_p11), [#allocation9], 4294966976 }
 0x118   : > { %1543 = dma.done.wait (%p2294_p5), [#allocation12], 192   ;;  %p2295_p4 = pmov %p2292_p3 }
 0x119   : > { %vm500_vm0 = vcmask 1043456   ;;  %v488_v0 = vld [vmem:[#allocation8] sm:$0xf]  ;;  %v2101_v1 = vld [vmem:[%s386_s24] sm:$0xff]  ;;  %s2296_s29 = sld [smem:[#allocation24_spill]]  ;;  %vm485_vm1 = vcmask 1040384   ;;  %v471_v10 = vlaneseq }
 0x11a   : > { %1545 = vsyncadd (%p2295_p4), [#allocation12], 4294967104  ;;  %v469_v2 = vld [vmem:[%s395_s2] sm:$0xff]  ;;  %1034 = vmatprep.subr.msk.mxu0 %vm500_vm0, %v488_v0  ;;  %v480_v4 = vrot.slane %v2101_v1, 7  ;;  %vm493_vm2 = vcmask 31744   ;;  %v470_v5 = vld [vmem:[%s404_s0] sm:$0xff] }
 0x11b   : > { %v477_v3 = vrot.slane %v469_v2, 7  ;;  %1035 = vmatpush3.msk.msra.mxu0 %vm500_vm0, %v488_v0  ;;  %v483_v6 = vrot.slane %v470_v5, 7  ;;  %v1619_v9 = vmov 0.0   ;;  %v2110_v11 = vshrl.u32 %v471_v10, 7  ;;  %v467_v16 = vld [vmem:[#allocation13] sm:$0xff]  ;;  %v629_v18 = vld [vmem:[#allocation10] sm:$0xff] }
 0x11c   : > { %1046 = vmatprep.subr.mxu0 %v1619_v9  ;;  %v630_v19 = vld [vmem:[#allocation10 + $0x8] sm:$0xf]  ;;  %vm1620_vm9 = vmmov 1   ;;  %v1621_v21 = vmov 0.0|0.0   ;;  %vm1622_vm13 = vmmov 0   ;;  %vm612_vm14 = vcmask 1046528  }
 0x11d   : > { %v486_v7 = vsel %vm485_vm1, %v477_v3, %v480_v4  ;;  %v487_v8 = vsel %vm485_vm1, %v480_v4, %v483_v6  ;;  %v583_v12 = vadd.s32 8, %v2110_v11  ;;  %v491_v15 = vsub.s32 0, %v2110_v11  ;;  %vm1053_vm10 = vmpackc.low %vm500_vm0, %vm1620_vm9  ;;  %1051 = vmatprep.subr.bf16.mxu1 %v1621_v21  ;;  %1043 = vmatprep.mubr.msk.f32.mxu1 %vm1622_vm13, %v1619_v9  ;;  %s1623_s0 = smov 4   ;;  %s1624_s5 = smov 8   ;;  %v713_v42 = vld [vmem:[#allocation11] sm:$0xf] }
 0x11e   : > { %1036 = vmatprep.mubr.msk.f32.mxu0 %vm493_vm2, %v486_v7  ;;  %vm585_vm5 = vcmp.eq.s32.totalorder %v2110_v11, 0  ;;  %v1052_v20 = vpack.c.bf16 %v630_v19, %v629_v18  ;;  %vm619_vm15 = vcmask 1045504   ;;  %vm627_vm1 = vcmask 64512   ;;  %s2297_s10 = sld [smem:[#allocation25_spill]]  ;;  %s2298_s22 = sshll.u32 %s2072_s3, 3 }
 0x11f   : > { %1037 = vmatmul.mubr.msk.f32.vlgmr.msra.gmra.mrb[0].mxu0 %vm493_vm2, %v487_v8  ;;  %p592_p1 = scmp.eq.s32.totalorder %s2296_s29, 1  ;;  %p584_p10 = scmp.eq.s32.totalorder %s2296_s29, 0  ;;  %vm594_vm3 = vcmp.eq.s32.totalorder %v583_v12, 9  ;;  %v492_v17 = vrot.slane %v467_v16, %v491_v15  ;;  %v633_v43 = vsub.s32 1, %v2110_v11  ;;  %v473_v49 = vsub.s32 3, %v2110_v11 }
 0x120   : > { %1054 = vmatpush3.bf16.msk.msra.mxu1 %vm1053_vm10, %v1052_v20  ;;  %1048 = vmatprep.mubr.msk.f32.mxu0 %vm1622_vm13, %v1619_v9  ;;  %v716_v50 = vsub.s32 2, %v2110_v11  ;;  %s460_s20 = scalar_lea.vmem [#allocation14], %s2298_s22  ;;  %s2299_s27 = sld [smem:[#allocation36_spill]] }
 0x121   : > { %s595_s15 = scalar_select %p592_p1, 1, 0  ;;  %1047 = vmatpush3.msk.msra.mxu0 %vm500_vm0, %v713_v42  ;;  %v634_v44 = vrot.slane %v467_v16, %v633_v43  ;;  %v474_v51 = vrot.slane %v467_v16, %v473_v49 }
 0x122   : > { %s587_s1 = scalar_select %p584_p10, 1, 0  ;;  %v717_v52 = vrot.slane %v467_v16, %v716_v50 }
 0x123   : > { %v596_v13 = vstv %s595_s15  ;;  %v475_v53 = vmul.f32 %v474_v51, %v2101_v1  ;;  %s813_s28 = sshll.u32 %s460_s20, 4  ;;  %p2301_p13 = scmp.ne.s32.totalorder %s2271_s23, 0  ;;  %s2132_s28 = int_to_ptr.vmem [resolvable:$true] %s813_s28 }
 0x124   : > { %v588_v14 = vstv %s587_s1  ;;  %vm597_vm4 = vcmp.eq.s32.totalorder %v596_v13, 1  ;;  %s1022_s24 = sshll.u32 %s2297_s10, 1 }
 0x125   : > { %vm589_vm6 = vcmp.eq.s32.totalorder %v588_v14, 1  ;;  %vm599_vm7 = vmand %vm597_vm4, %vm594_vm3  ;;  %vm635_vm3 = vcmask 97280   ;;  %s809_s11 = sadd.s32 %s2296_s29, %s1022_s24  ;;  %s798_s29 = scalar_lea.sflag [#allocation4], %s2072_s3 }
 0x126   : > { %vm590_vm8 = vmand %vm589_vm6, %vm585_vm5  ;;  %s1023_s18 = sshll.u32 %s809_s11, 7  ;;  %s2300_s15 = smov %s2299_s27 }
 0x127   : > { %vm603_vm11 = vmxor %vm599_vm7, %vm1620_vm9  ;;  %s2130_s1 = scalar_lea.hbm %s2299_s27, %s1023_s18 }
 0x128   : > { %vm602_vm12 = vmxor %vm590_vm8, %vm1620_vm9  ;;  %v1016_v25 = vsel %vm603_vm11, 1.0, %v1619_v9 }
 0x129   : > { %v1015_v28 = vsel %vm602_vm12, 1.0, %v1619_v9 }
 0x1f2   : > { %v1038_v22 = vpop.f32.mrb[0].mxu0 }
 0x1f3   : > { %v576_v23 = vadd.f32 %v1038_v22, %v492_v17  ;;  %v570_v24 = vpop.f32.mrb[1].mxu0 }
 0x1f4   : > { %v571_v26 = vadd.f32 %v570_v24, %v492_v17 }
 0x1f5   : > { %v580_v27 = vmax.f32 %v576_v23, 0.0 }
 0x1f6   : > { %v579_v29 = vmax.f32 %v571_v26, 0.0 }
 0x1f7   : > { %v609_v30 = vmul.f32 %v1016_v25, %v580_v27 }
 0x1f8   : > { %v608_v31 = vmul.f32 %v1015_v28, %v579_v29 }
 0x1f9   : > { %v614_v32 = vrot.slane %v609_v30, 1  ;;  %v621_v34 = vrot.slane %v609_v30, 2 }
 0x1fa   : > { %v613_v33 = vrot.slane %v608_v31, 1  ;;  %v620_v36 = vrot.slane %v608_v31, 2 }
 0x1fc   : > { %v615_v35 = vsel %vm612_vm14, %v613_v33, %v614_v32  ;;  %v622_v37 = vsel %vm619_vm15, %v620_v36, %v621_v34 }
 0x1fd   : > { %616 = vrot.lane.b32.xlu0 %v615_v35, %s1623_s0  ;;  %s1442_s0 = scalar_lea.vmem %s2132_s28, 128 }
 0x1fe   : > { %p1443_p8 = scmp.ne.s32.totalorder %s2132_s28, %s1442_s0 }
 0x200   : > { %p1444_p0 = pnand %p1443_p8, %p2301_p13 }
 0x201   : > { %623 = vrot.lane.b32.xlu0 %v622_v37, %s1624_s5  ;;  %s1625_s5 = smov [#allocation14]  }
 0x202   : > { %p1445_p6 = pneg %p1444_p0  ;;  %s1446_s10 = sshll.u32 %s1625_s5, 4  ;;  %s1447_s10 = int_to_ptr.vmem [resolvable:$false] %s1446_s10 }
 0x203   : > { %s1448_s24 = scalar_lea.vmem %s1447_s10, 256  ;;  %p1449_p7 = scmp.lt.s32.totalorder %s2132_s28, %s1447_s10 }
 0x204   : > { %p1450_p2 = scmp.lt.s32.totalorder %s1448_s24, %s1442_s0 }
 0x206   : > { %p1451_p9 = por %p1450_p2, %p1449_p7 }
 0x208   : > { %p1452_p12 = pnand %p1451_p9, %p1445_p6 }
 0x26f   : > { %v617_v38 = vpop.permute.xlu0 %616 }
 0x270   : > { %v626_v39 = vsel %vm493_vm2, %v608_v31, %v617_v38 }
 0x273   : > { %v624_v40 = vpop.permute.xlu0 %623 }
 0x274   : > { %v628_v41 = vsel %vm627_vm1, %v626_v39, %v624_v40 }
 0x275   : > { %1044 = vmatmul.mubr.msk.f32.vlgmr.msra.gmra.mrb[0].mxu1 %vm635_vm3, %v628_v41 }
 0x348   : > { %v708_v45 = vpop.f32.mrb[0].mxu1 }
 0x349   : > { %v709_v46 = vadd.f32 %v708_v45, %v634_v44  ;;  %v1045_v47 = vpop.f32.mrb[1].mxu1 }
 0x34b   : > { %v712_v48 = vmax.f32 %v709_v46, 0.0 }
 0x34d   : > { %1049 = vmatmul.mubr.msk.f32.vlgmr.msra.gmra.mrb[2].mxu0 %vm493_vm2, %v712_v48 }
 0x420   : > { %v790_v54 = vpop.f32.mrb[2].mxu0 }
 0x421   : > { %v791_v55 = vadd.f32 %v790_v54, %v717_v52  ;;  %v1050_v56 = vpop.f32.mrb[3].mxu0 }
 0x423   : > { %v794_v57 = vadd.f32 %v791_v55, %v475_v53 }
 0x425   : > { %v795_v58 = vmax.f32 %v794_v57, 0.0 }
 0x427   : > { %796 = vst.msk [vmem:[%s460_s20] sm:$0xff] %vm493_vm2, %v795_v58 }
 0x428   : > { %1455 = shalt.err (!%p1452_p12)
}
 0x429   : > { %s1456_s3 = scalar_lea.hbm %s2130_s1, 128  ;;  %s1460_s22 = scalar_lea.hbm %s2300_s15, 512 }
 0x42a   : > { %p1457_p3 = scmp.ne.s32.totalorder %s2130_s1, %s1456_s3  ;;  %p1461_p4 = scmp.lt.u32.totalorder %s2130_s1, %s2300_s15 }
 0x42b   : > { %p1462_p1 = scmp.lt.u32.totalorder %s1460_s22, %s1456_s3  ;;  %p1464_p8 = scmp.lt.u32.totalorder %s1456_s3, %s2130_s1 }
 0x42c   : > { %p1458_p11 = pnand %p1457_p3, %p2301_p13 }
 0x42d   : > { %p1463_p10 = por %p1462_p1, %p1461_p4 }
 0x42e   : > { %p1459_p5 = pneg %p1458_p11 }
 0x42f   : > { %p1465_p0 = por %p1464_p8, %p1463_p10 }
 0x431   : > { %p1466_p6 = pnand %p1465_p0, %p1459_p5 }
 0x433   : > { %1469 = shalt.err (!%p1466_p6)
}
 0x434   : > { %1077 = dma.vmem_to_hbm [thread:$0]  (%p2301_p13), %s2132_s28, 128, %s2130_s1, %s798_s29  }
 0x435 PF: > { %p1115_p7 = scmp.ge.s32.totalorder %s1608_s14, 2  ;;  %s825_s2 = sand.u32 1, %s1580_s30  }
 0x436   : > { %p2302_p2 = scmp.ne.s32.totalorder %s2272_s16, 0  ;;  %s826_s27 = scalar_lea.sflag [#allocation4], %s825_s2 }
 0x438   : > { %p1103_p9 = pnand %p1115_p7, %p2302_p2 }
 0x43a   : > { %1547 = dma.done.wait (!%p1103_p9), %s826_s27, 128  }
 0x43b   : > { %1549 = vsyncadd (!%p1103_p9), %s826_s27, 4294967168  ;;  %s28_s14 = sadd.s32 1, %s1608_s14   ;;  %s2304_s27 = sld [smem:[#allocation22_spill]] }
 0x43c   : > { %p2162_p12 = scmp.ge.s32.totalorder %s28_s14, 6   ;;  %s2305_s28 = sld [smem:[#allocation23_spill]] }
 0x43d   : > { %s2306_s29 = sld [smem:[#allocation30_spill]]  ;;  %s2307_s23 = sld [smem:[#allocation27_spill]] }
 0x43e   : > { %s2308_s16 = sld [smem:[#allocation28_spill]]  ;;  %s2309_s24 = smov %s1560_s25 }
 0x43f   : > { %s2310_s25 = smov %s1564_s26  ;;  %s2311_s26 = smov %s2026_s7 }
 0x440   : > { %s2312_s30 = smov %s1584_s8  ;;  %s2313_s8 = smov %s1588_s9 }
 0x441   : > { %s2314_s9 = smov %s1940_s21  ;;  %s2315_s10 = smov %s1600_s12 }
 0x442   : > { %s2316_s11 = smov %s1604_s13  ;;  %27 = sbr.rel (!%p2162_p12) target bundleno = 21 (0x15), region = 133 }
 0x443   : > { %s2317_s12 = smov %s2307_s23 }
 0x444   : > { %s2318_s13 = smov %s2308_s16 }
 0x449   :  { %831 = vsyncpa [#allocation3], 1 }
 0x44a   :  { %833 = vsyncpa [#allocation3 + $0x1], 1 }
 0x44b   :  { %834 = vsyncpa [#allocation6], 1 }
 0x44c   :  { %836 = vsyncpa [#allocation6 + $0x1], 1 }
 0x44d   :  { %837 = vsyncpa [#allocation9], 1 }
 0x44e   :  { %838 = vsyncpa [#allocation12], 1 }
 0x44f   :  { %839 = vsyncpa [#allocation4], 1 }
 0x450   :  { %841 = vsyncpa [#allocation4 + $0x1], 1 }

</bundles_post_ra>
